<compile_context>
chip_gen: v5e
topology: v5e:2x2
jax: 0.10.0
libtpu: 0.0.40
codegen_flags: <defaults>
</compile_context>

<pallas_src>
import functools

import jax
import jax.numpy as jnp
from jax import lax
from jax.experimental import pallas as pl
from jax.experimental.pallas import tpu as pltpu

EPS = 1e-5  # nn.BatchNorm2d default


def _expanding_block_kernel(x_ref, xskip_ref, up_ref, mask_ref,
                            w1u_ref, w1s_ref, w2_ref,
                            g1_ref, b1_ref, g2_ref, b2_ref,
                            o_ref, acc1_scr, *, W):
    """Fused: upsample -> (implicit concat) -> conv1 -> BN1 -> ReLU -> conv2 -> BN2 -> ReLU.

    Layout per sample: channels on sublanes, flattened H*W spatial on lanes, so every conv is
    a single MXU matmul with a lane-dense (Cout, H*W) result.
    """
    B, Cout, HW = o_ref.shape
    cdt = x_ref.dtype                      # MXU feed dtype (bf16 or f32)
    n = B * HW                             # elements per channel for BatchNorm stats

    masks = mask_ref[...]                  # (9, HW) conv zero-padding masks
    upmat = up_ref[...]                    # (h*w, HW) upsample + expand_padding matrix
    w1u = w1u_ref[...]                     # (Cout, 9*Cu)
    w1s = w1s_ref[...]                     # (Cout, 9*Cs)
    w2f = w2_ref[...]                      # (Cout, 9*Cout)

    def conv_slab(v):
        """im2col along K: stack the 9 shifted+masked copies of v (Cin, HW) -> (9*Cin, HW)."""
        taps = []
        for dy in range(3):
            for dx in range(3):
                t = dy * 3 + dx
                # output position p reads input position p + (dy-1)*W + (dx-1)
                shift = (1 - dy) * W + (1 - dx)
                rolled = jnp.roll(v, shift, axis=1) if shift != 0 else v
                taps.append(rolled * masks[t:t + 1, :])   # zero the out-of-image wrap
        return jnp.concatenate(taps, axis=0)

    # ---------------- pass 1: upsample (+expand_padding) and conv1, per sample -------------
    def pass1(b, carry):
        # bilinear x2 upsample + zero expand_padding folded into one interpolation matmul
        xup = jnp.dot(x_ref[b], upmat, preferred_element_type=jnp.float32)   # (Cu, HW)
        # torch.cat([x_up, x_skip], dim=C) is never materialized: split the K contraction
        a1 = (jnp.dot(w1u, conv_slab(xup.astype(cdt)),
                      preferred_element_type=jnp.float32) +
              jnp.dot(w1s, conv_slab(xskip_ref[b]),
                      preferred_element_type=jnp.float32))                   # (Cout, HW) f32
        acc1_scr[b] = a1
        return carry

    lax.fori_loop(0, B, pass1, 0, unroll=True)

    # ---------------- BatchNorm1 batch statistics (two-pass, f32, biased variance) ----------
    a1 = acc1_scr[...]                                                       # (B, Cout, HW)
    mean1 = jnp.sum(jnp.sum(a1, axis=2, keepdims=True), axis=0, keepdims=True) / n
    var1 = jnp.sum(jnp.sum((a1 - mean1) ** 2, axis=2, keepdims=True),
                   axis=0, keepdims=True) / n
    scale1 = g1_ref[...] * lax.rsqrt(var1[0] + EPS)                          # (Cout, 1)
    shift1 = b1_ref[...] - mean1[0] * scale1

    # ---------------- pass 2: BN1 + ReLU -> conv2 (hidden never leaves VMEM) ----------------
    def pass2(b, carry):
        h = jnp.maximum(acc1_scr[b] * scale1 + shift1, 0.0)                  # (Cout, HW) f32
        a2 = jnp.dot(w2f, conv_slab(h.astype(cdt)),
                     preferred_element_type=jnp.float32)                     # (Cout, HW) f32
        o_ref[b] = a2                                                        # o_ref doubles as acc2
        return carry

    lax.fori_loop(0, B, pass2, 0, unroll=True)

    # ---------------- BatchNorm2 statistics + BN2 + ReLU (lane-dense output) ----------------
    a2 = o_ref[...]
    mean2 = jnp.sum(jnp.sum(a2, axis=2, keepdims=True), axis=0, keepdims=True) / n
    var2 = jnp.sum(jnp.sum((a2 - mean2) ** 2, axis=2, keepdims=True),
                   axis=0, keepdims=True) / n
    scale2 = g2_ref[...] * lax.rsqrt(var2[0] + EPS)
    shift2 = b2_ref[...] - mean2[0] * scale2
    o_ref[...] = jnp.maximum(a2 * scale2[None] + shift2[None], 0.0)


def _bilinear_matrix(n_out, n_in):
    """1-D bilinear interpolation matrix (n_out, n_in), PyTorch align_corners=True."""
    if n_in == 1:
        return jnp.ones((n_out, 1), jnp.float32)
    if n_out == 1:
        return jnp.zeros((1, n_in), jnp.float32).at[0, 0].set(1.0)
    src = jnp.arange(n_out, dtype=jnp.float32) * (n_in - 1) / (n_out - 1)
    lo = jnp.clip(jnp.floor(src).astype(jnp.int32), 0, n_in - 2)
    frac = src - lo.astype(jnp.float32)
    rows = jnp.arange(n_out)
    m = jnp.zeros((n_out, n_in), jnp.float32)
    m = m.at[rows, lo].set(1.0 - frac)
    m = m.at[rows, lo + 1].add(frac)
    return m


def expanding_block(x, x_skip, w1, g1, b1, w2, g2, b2,
                    padding_style="zeros", compute_dtype=jnp.bfloat16):
    """ExpandingBlock forward.

    x:      (B, input_n,  h, w)   NCHW  (deep / expanding path)
    x_skip: (B, output_n, H, W)   NCHW  (skip / contracting path)
    w1:     (output_n, input_n+output_n, 3, 3) OIHW ; w2: (output_n, output_n, 3, 3) OIHW
    g*/b*:  (output_n,) BatchNorm2d weight / bias (training-mode batch statistics)
    """
    B, Cu, h, w = x.shape
    Bs, Cs, H, W = x_skip.shape
    assert Bs == B
    Cout = w2.shape[0]
    HW = H * W

    if padding_style not in ("zeros", "constant"):
        # TODO(synk): replicate/reflect expand_padding and conv padding_mode not implemented.
        raise NotImplementedError("only padding_style='zeros' is implemented")

    # Bilinear x2 upsample (align_corners=True) + zero expand_padding to (H, W), folded into a
    # single (h*w, H*W) interpolation matrix that is applied inside the kernel.
    pad_y, pad_x = H - 2 * h, W - 2 * w
    assert pad_y >= 0 and pad_x >= 0, "expand_padding: negative padding not supported"
    mh = jnp.zeros((H, h), jnp.float32).at[pad_y // 2:pad_y // 2 + 2 * h].set(
        _bilinear_matrix(2 * h, h))
    mw = jnp.zeros((W, w), jnp.float32).at[pad_x // 2:pad_x // 2 + 2 * w].set(
        _bilinear_matrix(2 * w, w))
    upmat_t = jnp.kron(mh, mw).T.astype(compute_dtype)            # (h*w, H*W)

    # Conv zero-padding masks (one per 3x3 tap) over the flattened (H, W) spatial index.
    yy = jnp.arange(H).reshape(H, 1)
    xx = jnp.arange(W).reshape(1, W)
    masks = jnp.concatenate(
        [((yy + dy - 1 >= 0) & (yy + dy - 1 < H) &
          (xx + dx - 1 >= 0) & (xx + dx - 1 < W)).reshape(1, HW)
         for dy in range(3) for dx in range(3)],
        axis=0).astype(compute_dtype)                              # (9, H*W)

    # OIHW -> (Cout, tap*Cin) so each conv is one MXU matmul with K = 9*Cin.
    def flat_w(wt):
        o, c = wt.shape[0], wt.shape[1]
        return jnp.transpose(wt, (0, 2, 3, 1)).reshape(o, 9 * c).astype(compute_dtype)

    w1u = flat_w(w1[:, :Cu])          # expanding-path slice of conv1   (Cout, 9*Cu)
    w1s = flat_w(w1[:, Cu:])          # skip-path slice of conv1        (Cout, 9*Cs)
    w2f = flat_w(w2)                  # conv2                           (Cout, 9*Cout)

    g1r = g1.reshape(-1, 1).astype(jnp.float32)
    b1r = b1.reshape(-1, 1).astype(jnp.float32)
    g2r = g2.reshape(-1, 1).astype(jnp.float32)
    b2r = b2.reshape(-1, 1).astype(jnp.float32)

    x_flat = x.reshape(B, Cu, h * w).astype(compute_dtype)         # free reshapes (NCHW)
    xskip_flat = x_skip.reshape(B, Cs, HW).astype(compute_dtype)

    out = pl.pallas_call(
        functools.partial(_expanding_block_kernel, W=W),
        out_shape=jax.ShapeDtypeStruct((B, Cout, HW), jnp.float32),
        # conv1 output must stay resident for the whole batch (BN1 uses batch statistics)
        scratch_shapes=[pltpu.VMEM((B, Cout, HW), jnp.float32)],
        compiler_params=pltpu.CompilerParams(vmem_limit_bytes=32 * 1024 * 1024),
    )(x_flat, xskip_flat, upmat_t, masks, w1u, w1s, w2f, g1r, b1r, g2r, b2r)

    # (B, Cout, H*W) -> NCHW is a free reshape; no transpose, no masked narrow stores.
    return out.reshape(B, Cout, H, W)


# ---------------------------- pure-JAX reference (validation) ----------------------------

def _upsample_bilinear_x2_ref(x):
    """NCHW bilinear x2, align_corners=True (explicit gather formulation)."""
    B, C, h, w = x.shape
    H, W = 2 * h, 2 * w
    ys = jnp.arange(H, dtype=jnp.float32) * (h - 1) / (H - 1)
    xs = jnp.arange(W, dtype=jnp.float32) * (w - 1) / (W - 1)
    y0 = jnp.clip(jnp.floor(ys).astype(jnp.int32), 0, h - 2)
    x0 = jnp.clip(jnp.floor(xs).astype(jnp.int32), 0, w - 2)
    fy = (ys - y0.astype(jnp.float32))[:, None]
    fx = (xs - x0.astype(jnp.float32))[None, :]
    r0, r1 = x[:, :, y0, :], x[:, :, y0 + 1, :]
    v00, v01 = r0[:, :, :, x0], r0[:, :, :, x0 + 1]
    v10, v11 = r1[:, :, :, x0], r1[:, :, :, x0 + 1]
    return (v00 * (1 - fy) * (1 - fx) + v01 * (1 - fy) * fx
            + v10 * fy * (1 - fx) + v11 * fy * fx)


def _reference_forward(x, x_skip, w1, g1, b1, w2, g2, b2):
    def conv(inp, wt):
        return jax.lax.conv_general_dilated(
            inp, wt, window_strides=(1, 1), padding=((1, 1), (1, 1)),
            dimension_numbers=("NCHW", "OIHW", "NCHW"))

    def bn(y, g, b):  # training-mode batch statistics (biased variance)
        m = jnp.mean(y, axis=(0, 2, 3), keepdims=True)
        v = jnp.mean((y - m) ** 2, axis=(0, 2, 3), keepdims=True)
        return g.reshape(1, -1, 1, 1) * (y - m) / jnp.sqrt(v + EPS) + b.reshape(1, -1, 1, 1)

    xup = _upsample_bilinear_x2_ref(x)            # expand_padding is a no-op at these shapes
    cat = jnp.concatenate([xup, x_skip], axis=1)
    h1 = jax.nn.relu(bn(conv(cat, w1), g1, b1))
    return jax.nn.relu(bn(conv(h1, w2), g2, b2))


if __name__ == "__main__":
    B, input_n, output_n = 2, 8, 4
    h, w = 8, 8                      # deep-path spatial; skip path is 2x -> 16x16
    H, W = 2 * h, 2 * w
    Ct = input_n + output_n

    key = jax.random.PRNGKey(0)
    kx, ks, k1, k2 = jax.random.split(key, 4)

    bound1 = 1.0 / jnp.sqrt(jnp.float32(Ct * 9))          # nn.Conv2d default init bound
    bound2 = 1.0 / jnp.sqrt(jnp.float32(output_n * 9))
    w1 = jax.random.uniform(k1, (output_n, Ct, 3, 3), jnp.float32, -bound1, bound1)
    w2 = jax.random.uniform(k2, (output_n, output_n, 3, 3), jnp.float32, -bound2, bound2)
    g1 = jnp.ones((output_n,), jnp.float32)               # BatchNorm2d defaults
    b1 = jnp.zeros((output_n,), jnp.float32)
    g2 = jnp.ones((output_n,), jnp.float32)
    b2 = jnp.zeros((output_n,), jnp.float32)

    x = jax.random.normal(kx, (B, input_n, h, w), jnp.float32)
    x_skip = jax.random.normal(ks, (B, output_n, H, W), jnp.float32)

    ref = jax.block_until_ready(_reference_forward(x, x_skip, w1, g1, b1, w2, g2, b2))

    # exactness check with f32 MXU feeds
    out32 = jax.block_until_ready(
        expanding_block(x, x_skip, w1, g1, b1, w2, g2, b2, compute_dtype=jnp.float32))
    assert out32.shape == (B, output_n, H, W)
    assert jnp.allclose(out32, ref, atol=5e-4, rtol=5e-4), float(jnp.max(jnp.abs(out32 - ref)))

    # production config: bf16 MXU feeds (BN statistics / normalization stay in f32)
    out16 = jax.block_until_ready(
        expanding_block(x, x_skip, w1, g1, b1, w2, g2, b2, compute_dtype=jnp.bfloat16))
    assert out16.shape == (B, output_n, H, W)
    assert jnp.allclose(out16, ref, atol=1e-1, rtol=1e-1), float(jnp.max(jnp.abs(out16 - ref)))

    print("KERNEL_OK")
</pallas_src>

<mosaic_0001>
module attributes {stable_mosaic.version = 11 : i64} {
  func.func @_expanding_block_kernel(%arg0: memref<2x8x64xf32, #tpu.memory_space<vmem>>, %arg1: memref<2x4x256xf32, #tpu.memory_space<vmem>>, %arg2: memref<64x256xf32, #tpu.memory_space<vmem>>, %arg3: memref<9x256xf32, #tpu.memory_space<vmem>>, %arg4: memref<4x72xf32, #tpu.memory_space<vmem>>, %arg5: memref<4x36xf32, #tpu.memory_space<vmem>>, %arg6: memref<4x36xf32, #tpu.memory_space<vmem>>, %arg7: memref<4x1xf32, #tpu.memory_space<vmem>>, %arg8: memref<4x1xf32, #tpu.memory_space<vmem>>, %arg9: memref<4x1xf32, #tpu.memory_space<vmem>>, %arg10: memref<4x1xf32, #tpu.memory_space<vmem>>, %arg11: memref<2x4x256xf32, #tpu.memory_space<vmem>>, %arg12: memref<2x4x256xf32, #tpu.memory_space<vmem>>) attributes {dimension_semantics = [], scalar_prefetch = 0 : i64, scratch_operands = 1 : i64, tpu.core_type = #tpu.core_type<tc>} {
    %c0 = arith.constant 0 : index
    %c0_0 = arith.constant 0 : index
    %0 = vector.load %arg3[%c0, %c0_0] : memref<9x256xf32, #tpu.memory_space<vmem>>, vector<9x256xf32>
    %c0_1 = arith.constant 0 : index
    %c0_2 = arith.constant 0 : index
    %1 = vector.load %arg2[%c0_1, %c0_2] : memref<64x256xf32, #tpu.memory_space<vmem>>, vector<64x256xf32>
    %c0_3 = arith.constant 0 : index
    %c0_4 = arith.constant 0 : index
    %2 = vector.load %arg4[%c0_3, %c0_4] : memref<4x72xf32, #tpu.memory_space<vmem>>, vector<4x72xf32>
    %c0_5 = arith.constant 0 : index
    %c0_6 = arith.constant 0 : index
    %3 = vector.load %arg5[%c0_5, %c0_6] : memref<4x36xf32, #tpu.memory_space<vmem>>, vector<4x36xf32>
    %c0_7 = arith.constant 0 : index
    %c0_8 = arith.constant 0 : index
    %4 = vector.load %arg6[%c0_7, %c0_8] : memref<4x36xf32, #tpu.memory_space<vmem>>, vector<4x36xf32>
    %c0_i32 = arith.constant 0 : i32
    %5 = arith.index_cast %c0_i32 : i32 to index
    %c0_9 = arith.constant 0 : index
    %c0_10 = arith.constant 0 : index
    %6 = vector.load %arg0[%5, %c0_9, %c0_10] : memref<2x8x64xf32, #tpu.memory_space<vmem>>, vector<1x8x64xf32>
    %7 = vector.shape_cast %6 : vector<1x8x64xf32> to vector<8x64xf32>
    %cst = arith.constant dense<0.000000e+00> : vector<8x256xf32>
    %8 = tpu.matmul %7, %1, %cst {dimension_numbers = #tpu.dot_dimension_numbers<[1], [0], [0], [1], [0, 0, 1, 1], [], []>} : vector<8x64xf32>, vector<64x256xf32>, vector<8x256xf32> -> vector<8x256xf32>
    %9 = vector.extract_strided_slice %8 {offsets = [0, 239], sizes = [8, 17], strides = [1, 1]} : vector<8x256xf32> to vector<8x17xf32>
    %10 = vector.extract_strided_slice %8 {offsets = [0, 0], sizes = [8, 239], strides = [1, 1]} : vector<8x256xf32> to vector<8x239xf32>
    %11 = tpu.concatenate %9, %10 in 1 : vector<8x17xf32>, vector<8x239xf32> -> vector<8x256xf32>
    %12 = vector.extract_strided_slice %0 {offsets = [0, 0], sizes = [1, 256], strides = [1, 1]} : vector<9x256xf32> to vector<1x256xf32>
    %13 = vector.broadcast %12 : vector<1x256xf32> to vector<8x256xf32>
    %14 = arith.mulf %11, %13 : vector<8x256xf32>
    %15 = vector.extract_strided_slice %8 {offsets = [0, 240], sizes = [8, 16], strides = [1, 1]} : vector<8x256xf32> to vector<8x16xf32>
    %16 = vector.extract_strided_slice %8 {offsets = [0, 0], sizes = [8, 240], strides = [1, 1]} : vector<8x256xf32> to vector<8x240xf32>
    %17 = tpu.concatenate %15, %16 in 1 : vector<8x16xf32>, vector<8x240xf32> -> vector<8x256xf32>
    %18 = vector.extract_strided_slice %0 {offsets = [1, 0], sizes = [1, 256], strides = [1, 1]} : vector<9x256xf32> to vector<1x256xf32>
    %19 = vector.broadcast %18 : vector<1x256xf32> to vector<8x256xf32>
    %20 = arith.mulf %17, %19 : vector<8x256xf32>
    %21 = vector.extract_strided_slice %8 {offsets = [0, 241], sizes = [8, 15], strides = [1, 1]} : vector<8x256xf32> to vector<8x15xf32>
    %22 = vector.extract_strided_slice %8 {offsets = [0, 0], sizes = [8, 241], strides = [1, 1]} : vector<8x256xf32> to vector<8x241xf32>
    %23 = tpu.concatenate %21, %22 in 1 : vector<8x15xf32>, vector<8x241xf32> -> vector<8x256xf32>
    %24 = vector.extract_strided_slice %0 {offsets = [2, 0], sizes = [1, 256], strides = [1, 1]} : vector<9x256xf32> to vector<1x256xf32>
    %25 = vector.broadcast %24 : vector<1x256xf32> to vector<8x256xf32>
    %26 = arith.mulf %23, %25 : vector<8x256xf32>
    %27 = vector.extract_strided_slice %8 {offsets = [0, 255], sizes = [8, 1], strides = [1, 1]} : vector<8x256xf32> to vector<8x1xf32>
    %28 = vector.extract_strided_slice %8 {offsets = [0, 0], sizes = [8, 255], strides = [1, 1]} : vector<8x256xf32> to vector<8x255xf32>
    %29 = tpu.concatenate %27, %28 in 1 : vector<8x1xf32>, vector<8x255xf32> -> vector<8x256xf32>
    %30 = vector.extract_strided_slice %0 {offsets = [3, 0], sizes = [1, 256], strides = [1, 1]} : vector<9x256xf32> to vector<1x256xf32>
    %31 = vector.broadcast %30 : vector<1x256xf32> to vector<8x256xf32>
    %32 = arith.mulf %29, %31 : vector<8x256xf32>
    %33 = vector.extract_strided_slice %0 {offsets = [4, 0], sizes = [1, 256], strides = [1, 1]} : vector<9x256xf32> to vector<1x256xf32>
    %34 = vector.broadcast %33 : vector<1x256xf32> to vector<8x256xf32>
    %35 = arith.mulf %8, %34 : vector<8x256xf32>
    %36 = vector.extract_strided_slice %8 {offsets = [0, 1], sizes = [8, 255], strides = [1, 1]} : vector<8x256xf32> to vector<8x255xf32>
    %37 = vector.extract_strided_slice %8 {offsets = [0, 0], sizes = [8, 1], strides = [1, 1]} : vector<8x256xf32> to vector<8x1xf32>
    %38 = tpu.concatenate %36, %37 in 1 : vector<8x255xf32>, vector<8x1xf32> -> vector<8x256xf32>
    %39 = vector.extract_strided_slice %0 {offsets = [5, 0], sizes = [1, 256], strides = [1, 1]} : vector<9x256xf32> to vector<1x256xf32>
    %40 = vector.broadcast %39 : vector<1x256xf32> to vector<8x256xf32>
    %41 = arith.mulf %38, %40 : vector<8x256xf32>
    %42 = vector.extract_strided_slice %8 {offsets = [0, 15], sizes = [8, 241], strides = [1, 1]} : vector<8x256xf32> to vector<8x241xf32>
    %43 = vector.extract_strided_slice %8 {offsets = [0, 0], sizes = [8, 15], strides = [1, 1]} : vector<8x256xf32> to vector<8x15xf32>
    %44 = tpu.concatenate %42, %43 in 1 : vector<8x241xf32>, vector<8x15xf32> -> vector<8x256xf32>
    %45 = vector.extract_strided_slice %0 {offsets = [6, 0], sizes = [1, 256], strides = [1, 1]} : vector<9x256xf32> to vector<1x256xf32>
    %46 = vector.broadcast %45 : vector<1x256xf32> to vector<8x256xf32>
    %47 = arith.mulf %44, %46 : vector<8x256xf32>
    %48 = vector.extract_strided_slice %8 {offsets = [0, 16], sizes = [8, 240], strides = [1, 1]} : vector<8x256xf32> to vector<8x240xf32>
    %49 = vector.extract_strided_slice %8 {offsets = [0, 0], sizes = [8, 16], strides = [1, 1]} : vector<8x256xf32> to vector<8x16xf32>
    %50 = tpu.concatenate %48, %49 in 1 : vector<8x240xf32>, vector<8x16xf32> -> vector<8x256xf32>
    %51 = vector.extract_strided_slice %0 {offsets = [7, 0], sizes = [1, 256], strides = [1, 1]} : vector<9x256xf32> to vector<1x256xf32>
    %52 = vector.broadcast %51 : vector<1x256xf32> to vector<8x256xf32>
    %53 = arith.mulf %50, %52 : vector<8x256xf32>
    %54 = vector.extract_strided_slice %8 {offsets = [0, 17], sizes = [8, 239], strides = [1, 1]} : vector<8x256xf32> to vector<8x239xf32>
    %55 = vector.extract_strided_slice %8 {offsets = [0, 0], sizes = [8, 17], strides = [1, 1]} : vector<8x256xf32> to vector<8x17xf32>
    %56 = tpu.concatenate %54, %55 in 1 : vector<8x239xf32>, vector<8x17xf32> -> vector<8x256xf32>
    %57 = vector.extract_strided_slice %0 {offsets = [8, 0], sizes = [1, 256], strides = [1, 1]} : vector<9x256xf32> to vector<1x256xf32>
    %58 = vector.broadcast %57 : vector<1x256xf32> to vector<8x256xf32>
    %59 = arith.mulf %56, %58 : vector<8x256xf32>
    %60 = tpu.concatenate %14, %20, %26, %32, %35, %41, %47, %53, %59 in 0 : vector<8x256xf32>, vector<8x256xf32>, vector<8x256xf32>, vector<8x256xf32>, vector<8x256xf32>, vector<8x256xf32>, vector<8x256xf32>, vector<8x256xf32>, vector<8x256xf32> -> vector<72x256xf32>
    %cst_11 = arith.constant dense<0.000000e+00> : vector<4x256xf32>
    %61 = tpu.matmul %2, %60, %cst_11 {dimension_numbers = #tpu.dot_dimension_numbers<[1], [0], [0], [1], [0, 0, 1, 1], [], []>} : vector<4x72xf32>, vector<72x256xf32>, vector<4x256xf32> -> vector<4x256xf32>
    %62 = arith.index_cast %c0_i32 : i32 to index
    %c0_12 = arith.constant 0 : index
    %c0_13 = arith.constant 0 : index
    %63 = vector.load %arg1[%62, %c0_12, %c0_13] : memref<2x4x256xf32, #tpu.memory_space<vmem>>, vector<1x4x256xf32>
    %64 = vector.shape_cast %63 : vector<1x4x256xf32> to vector<4x256xf32>
    %65 = vector.extract_strided_slice %64 {offsets = [0, 239], sizes = [4, 17], strides = [1, 1]} : vector<4x256xf32> to vector<4x17xf32>
    %66 = vector.extract_strided_slice %64 {offsets = [0, 0], sizes = [4, 239], strides = [1, 1]} : vector<4x256xf32> to vector<4x239xf32>
    %67 = tpu.concatenate %65, %66 in 1 : vector<4x17xf32>, vector<4x239xf32> -> vector<4x256xf32>
    %68 = vector.extract_strided_slice %0 {offsets = [0, 0], sizes = [1, 256], strides = [1, 1]} : vector<9x256xf32> to vector<1x256xf32>
    %69 = vector.broadcast %68 : vector<1x256xf32> to vector<4x256xf32>
    %70 = arith.mulf %67, %69 : vector<4x256xf32>
    %71 = vector.extract_strided_slice %64 {offsets = [0, 240], sizes = [4, 16], strides = [1, 1]} : vector<4x256xf32> to vector<4x16xf32>
    %72 = vector.extract_strided_slice %64 {offsets = [0, 0], sizes = [4, 240], strides = [1, 1]} : vector<4x256xf32> to vector<4x240xf32>
    %73 = tpu.concatenate %71, %72 in 1 : vector<4x16xf32>, vector<4x240xf32> -> vector<4x256xf32>
    %74 = vector.extract_strided_slice %0 {offsets = [1, 0], sizes = [1, 256], strides = [1, 1]} : vector<9x256xf32> to vector<1x256xf32>
    %75 = vector.broadcast %74 : vector<1x256xf32> to vector<4x256xf32>
    %76 = arith.mulf %73, %75 : vector<4x256xf32>
    %77 = vector.extract_strided_slice %64 {offsets = [0, 241], sizes = [4, 15], strides = [1, 1]} : vector<4x256xf32> to vector<4x15xf32>
    %78 = vector.extract_strided_slice %64 {offsets = [0, 0], sizes = [4, 241], strides = [1, 1]} : vector<4x256xf32> to vector<4x241xf32>
    %79 = tpu.concatenate %77, %78 in 1 : vector<4x15xf32>, vector<4x241xf32> -> vector<4x256xf32>
    %80 = vector.extract_strided_slice %0 {offsets = [2, 0], sizes = [1, 256], strides = [1, 1]} : vector<9x256xf32> to vector<1x256xf32>
    %81 = vector.broadcast %80 : vector<1x256xf32> to vector<4x256xf32>
    %82 = arith.mulf %79, %81 : vector<4x256xf32>
    %83 = vector.extract_strided_slice %64 {offsets = [0, 255], sizes = [4, 1], strides = [1, 1]} : vector<4x256xf32> to vector<4x1xf32>
    %84 = vector.extract_strided_slice %64 {offsets = [0, 0], sizes = [4, 255], strides = [1, 1]} : vector<4x256xf32> to vector<4x255xf32>
    %85 = tpu.concatenate %83, %84 in 1 : vector<4x1xf32>, vector<4x255xf32> -> vector<4x256xf32>
    %86 = vector.extract_strided_slice %0 {offsets = [3, 0], sizes = [1, 256], strides = [1, 1]} : vector<9x256xf32> to vector<1x256xf32>
    %87 = vector.broadcast %86 : vector<1x256xf32> to vector<4x256xf32>
    %88 = arith.mulf %85, %87 : vector<4x256xf32>
    %89 = vector.extract_strided_slice %0 {offsets = [4, 0], sizes = [1, 256], strides = [1, 1]} : vector<9x256xf32> to vector<1x256xf32>
    %90 = vector.broadcast %89 : vector<1x256xf32> to vector<4x256xf32>
    %91 = arith.mulf %64, %90 : vector<4x256xf32>
    %92 = vector.extract_strided_slice %64 {offsets = [0, 1], sizes = [4, 255], strides = [1, 1]} : vector<4x256xf32> to vector<4x255xf32>
    %93 = vector.extract_strided_slice %64 {offsets = [0, 0], sizes = [4, 1], strides = [1, 1]} : vector<4x256xf32> to vector<4x1xf32>
    %94 = tpu.concatenate %92, %93 in 1 : vector<4x255xf32>, vector<4x1xf32> -> vector<4x256xf32>
    %95 = vector.extract_strided_slice %0 {offsets = [5, 0], sizes = [1, 256], strides = [1, 1]} : vector<9x256xf32> to vector<1x256xf32>
    %96 = vector.broadcast %95 : vector<1x256xf32> to vector<4x256xf32>
    %97 = arith.mulf %94, %96 : vector<4x256xf32>
    %98 = vector.extract_strided_slice %64 {offsets = [0, 15], sizes = [4, 241], strides = [1, 1]} : vector<4x256xf32> to vector<4x241xf32>
    %99 = vector.extract_strided_slice %64 {offsets = [0, 0], sizes = [4, 15], strides = [1, 1]} : vector<4x256xf32> to vector<4x15xf32>
    %100 = tpu.concatenate %98, %99 in 1 : vector<4x241xf32>, vector<4x15xf32> -> vector<4x256xf32>
    %101 = vector.extract_strided_slice %0 {offsets = [6, 0], sizes = [1, 256], strides = [1, 1]} : vector<9x256xf32> to vector<1x256xf32>
    %102 = vector.broadcast %101 : vector<1x256xf32> to vector<4x256xf32>
    %103 = arith.mulf %100, %102 : vector<4x256xf32>
    %104 = vector.extract_strided_slice %64 {offsets = [0, 16], sizes = [4, 240], strides = [1, 1]} : vector<4x256xf32> to vector<4x240xf32>
    %105 = vector.extract_strided_slice %64 {offsets = [0, 0], sizes = [4, 16], strides = [1, 1]} : vector<4x256xf32> to vector<4x16xf32>
    %106 = tpu.concatenate %104, %105 in 1 : vector<4x240xf32>, vector<4x16xf32> -> vector<4x256xf32>
    %107 = vector.extract_strided_slice %0 {offsets = [7, 0], sizes = [1, 256], strides = [1, 1]} : vector<9x256xf32> to vector<1x256xf32>
    %108 = vector.broadcast %107 : vector<1x256xf32> to vector<4x256xf32>
    %109 = arith.mulf %106, %108 : vector<4x256xf32>
    %110 = vector.extract_strided_slice %64 {offsets = [0, 17], sizes = [4, 239], strides = [1, 1]} : vector<4x256xf32> to vector<4x239xf32>
    %111 = vector.extract_strided_slice %64 {offsets = [0, 0], sizes = [4, 17], strides = [1, 1]} : vector<4x256xf32> to vector<4x17xf32>
    %112 = tpu.concatenate %110, %111 in 1 : vector<4x239xf32>, vector<4x17xf32> -> vector<4x256xf32>
    %113 = vector.extract_strided_slice %0 {offsets = [8, 0], sizes = [1, 256], strides = [1, 1]} : vector<9x256xf32> to vector<1x256xf32>
    %114 = vector.broadcast %113 : vector<1x256xf32> to vector<4x256xf32>
    %115 = arith.mulf %112, %114 : vector<4x256xf32>
    %116 = tpu.concatenate %70, %76, %82, %88, %91, %97, %103, %109, %115 in 0 : vector<4x256xf32>, vector<4x256xf32>, vector<4x256xf32>, vector<4x256xf32>, vector<4x256xf32>, vector<4x256xf32>, vector<4x256xf32>, vector<4x256xf32>, vector<4x256xf32> -> vector<36x256xf32>
    %cst_14 = arith.constant dense<0.000000e+00> : vector<4x256xf32>
    %117 = tpu.matmul %3, %116, %cst_14 {dimension_numbers = #tpu.dot_dimension_numbers<[1], [0], [0], [1], [0, 0, 1, 1], [], []>} : vector<4x36xf32>, vector<36x256xf32>, vector<4x256xf32> -> vector<4x256xf32>
    %118 = arith.addf %61, %117 : vector<4x256xf32>
    %119 = arith.index_cast %c0_i32 : i32 to index
    %c0_15 = arith.constant 0 : index
    %c0_16 = arith.constant 0 : index
    %120 = vector.load %arg12[%119, %c0_15, %c0_16] : memref<2x4x256xf32, #tpu.memory_space<vmem>>, vector<1x4x256xf32>
    %121 = vector.shape_cast %120 : vector<1x4x256xf32> to vector<4x256xf32>
    %122 = vector.shape_cast %118 : vector<4x256xf32> to vector<1x4x256xf32>
    tpu.vector_store %arg12[%119, %c0_15, %c0_16], %122 {strides = array<i32>} : memref<2x4x256xf32, #tpu.memory_space<vmem>>, vector<1x4x256xf32>,
    %c1_i32 = arith.constant 1 : i32
    %123 = arith.index_cast %c1_i32 : i32 to index
    %c0_17 = arith.constant 0 : index
    %c0_18 = arith.constant 0 : index
    %124 = vector.load %arg0[%123, %c0_17, %c0_18] : memref<2x8x64xf32, #tpu.memory_space<vmem>>, vector<1x8x64xf32>
    %125 = vector.shape_cast %124 : vector<1x8x64xf32> to vector<8x64xf32>
    %cst_19 = arith.constant dense<0.000000e+00> : vector<8x256xf32>
    %126 = tpu.matmul %125, %1, %cst_19 {dimension_numbers = #tpu.dot_dimension_numbers<[1], [0], [0], [1], [0, 0, 1, 1], [], []>} : vector<8x64xf32>, vector<64x256xf32>, vector<8x256xf32> -> vector<8x256xf32>
    %127 = vector.extract_strided_slice %126 {offsets = [0, 239], sizes = [8, 17], strides = [1, 1]} : vector<8x256xf32> to vector<8x17xf32>
    %128 = vector.extract_strided_slice %126 {offsets = [0, 0], sizes = [8, 239], strides = [1, 1]} : vector<8x256xf32> to vector<8x239xf32>
    %129 = tpu.concatenate %127, %128 in 1 : vector<8x17xf32>, vector<8x239xf32> -> vector<8x256xf32>
    %130 = vector.extract_strided_slice %0 {offsets = [0, 0], sizes = [1, 256], strides = [1, 1]} : vector<9x256xf32> to vector<1x256xf32>
    %131 = vector.broadcast %130 : vector<1x256xf32> to vector<8x256xf32>
    %132 = arith.mulf %129, %131 : vector<8x256xf32>
    %133 = vector.extract_strided_slice %126 {offsets = [0, 240], sizes = [8, 16], strides = [1, 1]} : vector<8x256xf32> to vector<8x16xf32>
    %134 = vector.extract_strided_slice %126 {offsets = [0, 0], sizes = [8, 240], strides = [1, 1]} : vector<8x256xf32> to vector<8x240xf32>
    %135 = tpu.concatenate %133, %134 in 1 : vector<8x16xf32>, vector<8x240xf32> -> vector<8x256xf32>
    %136 = vector.extract_strided_slice %0 {offsets = [1, 0], sizes = [1, 256], strides = [1, 1]} : vector<9x256xf32> to vector<1x256xf32>
    %137 = vector.broadcast %136 : vector<1x256xf32> to vector<8x256xf32>
    %138 = arith.mulf %135, %137 : vector<8x256xf32>
    %139 = vector.extract_strided_slice %126 {offsets = [0, 241], sizes = [8, 15], strides = [1, 1]} : vector<8x256xf32> to vector<8x15xf32>
    %140 = vector.extract_strided_slice %126 {offsets = [0, 0], sizes = [8, 241], strides = [1, 1]} : vector<8x256xf32> to vector<8x241xf32>
    %141 = tpu.concatenate %139, %140 in 1 : vector<8x15xf32>, vector<8x241xf32> -> vector<8x256xf32>
    %142 = vector.extract_strided_slice %0 {offsets = [2, 0], sizes = [1, 256], strides = [1, 1]} : vector<9x256xf32> to vector<1x256xf32>
    %143 = vector.broadcast %142 : vector<1x256xf32> to vector<8x256xf32>
    %144 = arith.mulf %141, %143 : vector<8x256xf32>
    %145 = vector.extract_strided_slice %126 {offsets = [0, 255], sizes = [8, 1], strides = [1, 1]} : vector<8x256xf32> to vector<8x1xf32>
    %146 = vector.extract_strided_slice %126 {offsets = [0, 0], sizes = [8, 255], strides = [1, 1]} : vector<8x256xf32> to vector<8x255xf32>
    %147 = tpu.concatenate %145, %146 in 1 : vector<8x1xf32>, vector<8x255xf32> -> vector<8x256xf32>
    %148 = vector.extract_strided_slice %0 {offsets = [3, 0], sizes = [1, 256], strides = [1, 1]} : vector<9x256xf32> to vector<1x256xf32>
    %149 = vector.broadcast %148 : vector<1x256xf32> to vector<8x256xf32>
    %150 = arith.mulf %147, %149 : vector<8x256xf32>
    %151 = vector.extract_strided_slice %0 {offsets = [4, 0], sizes = [1, 256], strides = [1, 1]} : vector<9x256xf32> to vector<1x256xf32>
    %152 = vector.broadcast %151 : vector<1x256xf32> to vector<8x256xf32>
    %153 = arith.mulf %126, %152 : vector<8x256xf32>
    %154 = vector.extract_strided_slice %126 {offsets = [0, 1], sizes = [8, 255], strides = [1, 1]} : vector<8x256xf32> to vector<8x255xf32>
    %155 = vector.extract_strided_slice %126 {offsets = [0, 0], sizes = [8, 1], strides = [1, 1]} : vector<8x256xf32> to vector<8x1xf32>
    %156 = tpu.concatenate %154, %155 in 1 : vector<8x255xf32>, vector<8x1xf32> -> vector<8x256xf32>
    %157 = vector.extract_strided_slice %0 {offsets = [5, 0], sizes = [1, 256], strides = [1, 1]} : vector<9x256xf32> to vector<1x256xf32>
    %158 = vector.broadcast %157 : vector<1x256xf32> to vector<8x256xf32>
    %159 = arith.mulf %156, %158 : vector<8x256xf32>
    %160 = vector.extract_strided_slice %126 {offsets = [0, 15], sizes = [8, 241], strides = [1, 1]} : vector<8x256xf32> to vector<8x241xf32>
    %161 = vector.extract_strided_slice %126 {offsets = [0, 0], sizes = [8, 15], strides = [1, 1]} : vector<8x256xf32> to vector<8x15xf32>
    %162 = tpu.concatenate %160, %161 in 1 : vector<8x241xf32>, vector<8x15xf32> -> vector<8x256xf32>
    %163 = vector.extract_strided_slice %0 {offsets = [6, 0], sizes = [1, 256], strides = [1, 1]} : vector<9x256xf32> to vector<1x256xf32>
    %164 = vector.broadcast %163 : vector<1x256xf32> to vector<8x256xf32>
    %165 = arith.mulf %162, %164 : vector<8x256xf32>
    %166 = vector.extract_strided_slice %126 {offsets = [0, 16], sizes = [8, 240], strides = [1, 1]} : vector<8x256xf32> to vector<8x240xf32>
    %167 = vector.extract_strided_slice %126 {offsets = [0, 0], sizes = [8, 16], strides = [1, 1]} : vector<8x256xf32> to vector<8x16xf32>
    %168 = tpu.concatenate %166, %167 in 1 : vector<8x240xf32>, vector<8x16xf32> -> vector<8x256xf32>
    %169 = vector.extract_strided_slice %0 {offsets = [7, 0], sizes = [1, 256], strides = [1, 1]} : vector<9x256xf32> to vector<1x256xf32>
    %170 = vector.broadcast %169 : vector<1x256xf32> to vector<8x256xf32>
    %171 = arith.mulf %168, %170 : vector<8x256xf32>
    %172 = vector.extract_strided_slice %126 {offsets = [0, 17], sizes = [8, 239], strides = [1, 1]} : vector<8x256xf32> to vector<8x239xf32>
    %173 = vector.extract_strided_slice %126 {offsets = [0, 0], sizes = [8, 17], strides = [1, 1]} : vector<8x256xf32> to vector<8x17xf32>
    %174 = tpu.concatenate %172, %173 in 1 : vector<8x239xf32>, vector<8x17xf32> -> vector<8x256xf32>
    %175 = vector.extract_strided_slice %0 {offsets = [8, 0], sizes = [1, 256], strides = [1, 1]} : vector<9x256xf32> to vector<1x256xf32>
    %176 = vector.broadcast %175 : vector<1x256xf32> to vector<8x256xf32>
    %177 = arith.mulf %174, %176 : vector<8x256xf32>
    %178 = tpu.concatenate %132, %138, %144, %150, %153, %159, %165, %171, %177 in 0 : vector<8x256xf32>, vector<8x256xf32>, vector<8x256xf32>, vector<8x256xf32>, vector<8x256xf32>, vector<8x256xf32>, vector<8x256xf32>, vector<8x256xf32>, vector<8x256xf32> -> vector<72x256xf32>
    %cst_20 = arith.constant dense<0.000000e+00> : vector<4x256xf32>
    %179 = tpu.matmul %2, %178, %cst_20 {dimension_numbers = #tpu.dot_dimension_numbers<[1], [0], [0], [1], [0, 0, 1, 1], [], []>} : vector<4x72xf32>, vector<72x256xf32>, vector<4x256xf32> -> vector<4x256xf32>
    %180 = arith.index_cast %c1_i32 : i32 to index
    %c0_21 = arith.constant 0 : index
    %c0_22 = arith.constant 0 : index
    %181 = vector.load %arg1[%180, %c0_21, %c0_22] : memref<2x4x256xf32, #tpu.memory_space<vmem>>, vector<1x4x256xf32>
    %182 = vector.shape_cast %181 : vector<1x4x256xf32> to vector<4x256xf32>
    %183 = vector.extract_strided_slice %182 {offsets = [0, 239], sizes = [4, 17], strides = [1, 1]} : vector<4x256xf32> to vector<4x17xf32>
    %184 = vector.extract_strided_slice %182 {offsets = [0, 0], sizes = [4, 239], strides = [1, 1]} : vector<4x256xf32> to vector<4x239xf32>
    %185 = tpu.concatenate %183, %184 in 1 : vector<4x17xf32>, vector<4x239xf32> -> vector<4x256xf32>
    %186 = vector.extract_strided_slice %0 {offsets = [0, 0], sizes = [1, 256], strides = [1, 1]} : vector<9x256xf32> to vector<1x256xf32>
    %187 = vector.broadcast %186 : vector<1x256xf32> to vector<4x256xf32>
    %188 = arith.mulf %185, %187 : vector<4x256xf32>
    %189 = vector.extract_strided_slice %182 {offsets = [0, 240], sizes = [4, 16], strides = [1, 1]} : vector<4x256xf32> to vector<4x16xf32>
    %190 = vector.extract_strided_slice %182 {offsets = [0, 0], sizes = [4, 240], strides = [1, 1]} : vector<4x256xf32> to vector<4x240xf32>
    %191 = tpu.concatenate %189, %190 in 1 : vector<4x16xf32>, vector<4x240xf32> -> vector<4x256xf32>
    %192 = vector.extract_strided_slice %0 {offsets = [1, 0], sizes = [1, 256], strides = [1, 1]} : vector<9x256xf32> to vector<1x256xf32>
    %193 = vector.broadcast %192 : vector<1x256xf32> to vector<4x256xf32>
    %194 = arith.mulf %191, %193 : vector<4x256xf32>
    %195 = vector.extract_strided_slice %182 {offsets = [0, 241], sizes = [4, 15], strides = [1, 1]} : vector<4x256xf32> to vector<4x15xf32>
    %196 = vector.extract_strided_slice %182 {offsets = [0, 0], sizes = [4, 241], strides = [1, 1]} : vector<4x256xf32> to vector<4x241xf32>
    %197 = tpu.concatenate %195, %196 in 1 : vector<4x15xf32>, vector<4x241xf32> -> vector<4x256xf32>
    %198 = vector.extract_strided_slice %0 {offsets = [2, 0], sizes = [1, 256], strides = [1, 1]} : vector<9x256xf32> to vector<1x256xf32>
    %199 = vector.broadcast %198 : vector<1x256xf32> to vector<4x256xf32>
    %200 = arith.mulf %197, %199 : vector<4x256xf32>
    %201 = vector.extract_strided_slice %182 {offsets = [0, 255], sizes = [4, 1], strides = [1, 1]} : vector<4x256xf32> to vector<4x1xf32>
    %202 = vector.extract_strided_slice %182 {offsets = [0, 0], sizes = [4, 255], strides = [1, 1]} : vector<4x256xf32> to vector<4x255xf32>
    %203 = tpu.concatenate %201, %202 in 1 : vector<4x1xf32>, vector<4x255xf32> -> vector<4x256xf32>
    %204 = vector.extract_strided_slice %0 {offsets = [3, 0], sizes = [1, 256], strides = [1, 1]} : vector<9x256xf32> to vector<1x256xf32>
    %205 = vector.broadcast %204 : vector<1x256xf32> to vector<4x256xf32>
    %206 = arith.mulf %203, %205 : vector<4x256xf32>
    %207 = vector.extract_strided_slice %0 {offsets = [4, 0], sizes = [1, 256], strides = [1, 1]} : vector<9x256xf32> to vector<1x256xf32>
    %208 = vector.broadcast %207 : vector<1x256xf32> to vector<4x256xf32>
    %209 = arith.mulf %182, %208 : vector<4x256xf32>
    %210 = vector.extract_strided_slice %182 {offsets = [0, 1], sizes = [4, 255], strides = [1, 1]} : vector<4x256xf32> to vector<4x255xf32>
    %211 = vector.extract_strided_slice %182 {offsets = [0, 0], sizes = [4, 1], strides = [1, 1]} : vector<4x256xf32> to vector<4x1xf32>
    %212 = tpu.concatenate %210, %211 in 1 : vector<4x255xf32>, vector<4x1xf32> -> vector<4x256xf32>
    %213 = vector.extract_strided_slice %0 {offsets = [5, 0], sizes = [1, 256], strides = [1, 1]} : vector<9x256xf32> to vector<1x256xf32>
    %214 = vector.broadcast %213 : vector<1x256xf32> to vector<4x256xf32>
    %215 = arith.mulf %212, %214 : vector<4x256xf32>
    %216 = vector.extract_strided_slice %182 {offsets = [0, 15], sizes = [4, 241], strides = [1, 1]} : vector<4x256xf32> to vector<4x241xf32>
    %217 = vector.extract_strided_slice %182 {offsets = [0, 0], sizes = [4, 15], strides = [1, 1]} : vector<4x256xf32> to vector<4x15xf32>
    %218 = tpu.concatenate %216, %217 in 1 : vector<4x241xf32>, vector<4x15xf32> -> vector<4x256xf32>
    %219 = vector.extract_strided_slice %0 {offsets = [6, 0], sizes = [1, 256], strides = [1, 1]} : vector<9x256xf32> to vector<1x256xf32>
    %220 = vector.broadcast %219 : vector<1x256xf32> to vector<4x256xf32>
    %221 = arith.mulf %218, %220 : vector<4x256xf32>
    %222 = vector.extract_strided_slice %182 {offsets = [0, 16], sizes = [4, 240], strides = [1, 1]} : vector<4x256xf32> to vector<4x240xf32>
    %223 = vector.extract_strided_slice %182 {offsets = [0, 0], sizes = [4, 16], strides = [1, 1]} : vector<4x256xf32> to vector<4x16xf32>
    %224 = tpu.concatenate %222, %223 in 1 : vector<4x240xf32>, vector<4x16xf32> -> vector<4x256xf32>
    %225 = vector.extract_strided_slice %0 {offsets = [7, 0], sizes = [1, 256], strides = [1, 1]} : vector<9x256xf32> to vector<1x256xf32>
    %226 = vector.broadcast %225 : vector<1x256xf32> to vector<4x256xf32>
    %227 = arith.mulf %224, %226 : vector<4x256xf32>
    %228 = vector.extract_strided_slice %182 {offsets = [0, 17], sizes = [4, 239], strides = [1, 1]} : vector<4x256xf32> to vector<4x239xf32>
    %229 = vector.extract_strided_slice %182 {offsets = [0, 0], sizes = [4, 17], strides = [1, 1]} : vector<4x256xf32> to vector<4x17xf32>
    %230 = tpu.concatenate %228, %229 in 1 : vector<4x239xf32>, vector<4x17xf32> -> vector<4x256xf32>
    %231 = vector.extract_strided_slice %0 {offsets = [8, 0], sizes = [1, 256], strides = [1, 1]} : vector<9x256xf32> to vector<1x256xf32>
    %232 = vector.broadcast %231 : vector<1x256xf32> to vector<4x256xf32>
    %233 = arith.mulf %230, %232 : vector<4x256xf32>
    %234 = tpu.concatenate %188, %194, %200, %206, %209, %215, %221, %227, %233 in 0 : vector<4x256xf32>, vector<4x256xf32>, vector<4x256xf32>, vector<4x256xf32>, vector<4x256xf32>, vector<4x256xf32>, vector<4x256xf32>, vector<4x256xf32>, vector<4x256xf32> -> vector<36x256xf32>
    %cst_23 = arith.constant dense<0.000000e+00> : vector<4x256xf32>
    %235 = tpu.matmul %3, %234, %cst_23 {dimension_numbers = #tpu.dot_dimension_numbers<[1], [0], [0], [1], [0, 0, 1, 1], [], []>} : vector<4x36xf32>, vector<36x256xf32>, vector<4x256xf32> -> vector<4x256xf32>
    %236 = arith.addf %179, %235 : vector<4x256xf32>
    %237 = arith.index_cast %c1_i32 : i32 to index
    %c0_24 = arith.constant 0 : index
    %c0_25 = arith.constant 0 : index
    %238 = vector.load %arg12[%237, %c0_24, %c0_25] : memref<2x4x256xf32, #tpu.memory_space<vmem>>, vector<1x4x256xf32>
    %239 = vector.shape_cast %238 : vector<1x4x256xf32> to vector<4x256xf32>
    %240 = vector.shape_cast %236 : vector<4x256xf32> to vector<1x4x256xf32>
    tpu.vector_store %arg12[%237, %c0_24, %c0_25], %240 {strides = array<i32>} : memref<2x4x256xf32, #tpu.memory_space<vmem>>, vector<1x4x256xf32>,
    %c2_i32 = arith.constant 2 : i32
    %c0_26 = arith.constant 0 : index
    %c0_27 = arith.constant 0 : index
    %c0_28 = arith.constant 0 : index
    %241 = vector.load %arg12[%c0_26, %c0_27, %c0_28] : memref<2x4x256xf32, #tpu.memory_space<vmem>>, vector<2x4x256xf32>
    %cst_29 = arith.constant dense<0.000000e+00> : vector<2x4xf32>
    %242 = vector.multi_reduction <add>, %241, %cst_29 [2] : vector<2x4x256xf32> to vector<2x4xf32>
    %243 = vector.shape_cast %242 : vector<2x4xf32> to vector<2x4x1xf32>
    %cst_30 = arith.constant dense<0.000000e+00> : vector<4x1xf32>
    %244 = vector.multi_reduction <add>, %243, %cst_30 [0] : vector<2x4x1xf32> to vector<4x1xf32>
    %245 = vector.shape_cast %244 : vector<4x1xf32> to vector<1x4x1xf32>
    %cst_31 = arith.constant 5.120000e+02 : f32
    %246 = vector.broadcast %cst_31 : f32 to vector<1x4x1xf32>
    %247 = arith.divf %245, %246 : vector<1x4x1xf32>
    %248 = vector.broadcast %247 : vector<1x4x1xf32> to vector<2x4x256xf32>
    %249 = arith.subf %241, %248 : vector<2x4x256xf32>
    %250 = arith.mulf %249, %249 : vector<2x4x256xf32>
    %cst_32 = arith.constant dense<0.000000e+00> : vector<2x4xf32>
    %251 = vector.multi_reduction <add>, %250, %cst_32 [2] : vector<2x4x256xf32> to vector<2x4xf32>
    %252 = vector.shape_cast %251 : vector<2x4xf32> to vector<2x4x1xf32>
    %cst_33 = arith.constant dense<0.000000e+00> : vector<4x1xf32>
    %253 = vector.multi_reduction <add>, %252, %cst_33 [0] : vector<2x4x1xf32> to vector<4x1xf32>
    %254 = vector.shape_cast %253 : vector<4x1xf32> to vector<1x4x1xf32>
    %cst_34 = arith.constant 5.120000e+02 : f32
    %255 = vector.broadcast %cst_34 : f32 to vector<1x4x1xf32>
    %256 = arith.divf %254, %255 : vector<1x4x1xf32>
    %c0_35 = arith.constant 0 : index
    %c0_36 = arith.constant 0 : index
    %257 = vector.load %arg7[%c0_35, %c0_36] : memref<4x1xf32, #tpu.memory_space<vmem>>, vector<4x1xf32>
    %258 = vector.shape_cast %256 : vector<1x4x1xf32> to vector<4x1xf32>
    %cst_37 = arith.constant 9.99999974E-6 : f32
    %259 = vector.broadcast %cst_37 : f32 to vector<4x1xf32>
    %260 = arith.addf %258, %259 : vector<4x1xf32>
    %261 = math.rsqrt %260 : vector<4x1xf32>
    %262 = arith.mulf %257, %261 : vector<4x1xf32>
    %c0_38 = arith.constant 0 : index
    %c0_39 = arith.constant 0 : index
    %263 = vector.load %arg8[%c0_38, %c0_39] : memref<4x1xf32, #tpu.memory_space<vmem>>, vector<4x1xf32>
    %264 = vector.shape_cast %247 : vector<1x4x1xf32> to vector<4x1xf32>
    %265 = arith.mulf %264, %262 : vector<4x1xf32>
    %266 = arith.subf %263, %265 : vector<4x1xf32>
    %c0_i32_40 = arith.constant 0 : i32
    %267 = arith.index_cast %c0_i32_40 : i32 to index
    %c0_41 = arith.constant 0 : index
    %c0_42 = arith.constant 0 : index
    %268 = vector.load %arg12[%267, %c0_41, %c0_42] : memref<2x4x256xf32, #tpu.memory_space<vmem>>, vector<1x4x256xf32>
    %269 = vector.shape_cast %268 : vector<1x4x256xf32> to vector<4x256xf32>
    %270 = vector.broadcast %262 : vector<4x1xf32> to vector<4x256xf32>
    %271 = arith.mulf %269, %270 : vector<4x256xf32>
    %272 = vector.broadcast %266 : vector<4x1xf32> to vector<4x256xf32>
    %273 = arith.addf %271, %272 : vector<4x256xf32>
    %cst_43 = arith.constant 0.000000e+00 : f32
    %274 = vector.broadcast %cst_43 : f32 to vector<4x256xf32>
    %275 = arith.maximumf %273, %274 : vector<4x256xf32>
    %276 = vector.extract_strided_slice %275 {offsets = [0, 239], sizes = [4, 17], strides = [1, 1]} : vector<4x256xf32> to vector<4x17xf32>
    %277 = vector.extract_strided_slice %275 {offsets = [0, 0], sizes = [4, 239], strides = [1, 1]} : vector<4x256xf32> to vector<4x239xf32>
    %278 = tpu.concatenate %276, %277 in 1 : vector<4x17xf32>, vector<4x239xf32> -> vector<4x256xf32>
    %279 = vector.extract_strided_slice %0 {offsets = [0, 0], sizes = [1, 256], strides = [1, 1]} : vector<9x256xf32> to vector<1x256xf32>
    %280 = vector.broadcast %279 : vector<1x256xf32> to vector<4x256xf32>
    %281 = arith.mulf %278, %280 : vector<4x256xf32>
    %282 = vector.extract_strided_slice %275 {offsets = [0, 240], sizes = [4, 16], strides = [1, 1]} : vector<4x256xf32> to vector<4x16xf32>
    %283 = vector.extract_strided_slice %275 {offsets = [0, 0], sizes = [4, 240], strides = [1, 1]} : vector<4x256xf32> to vector<4x240xf32>
    %284 = tpu.concatenate %282, %283 in 1 : vector<4x16xf32>, vector<4x240xf32> -> vector<4x256xf32>
    %285 = vector.extract_strided_slice %0 {offsets = [1, 0], sizes = [1, 256], strides = [1, 1]} : vector<9x256xf32> to vector<1x256xf32>
    %286 = vector.broadcast %285 : vector<1x256xf32> to vector<4x256xf32>
    %287 = arith.mulf %284, %286 : vector<4x256xf32>
    %288 = vector.extract_strided_slice %275 {offsets = [0, 241], sizes = [4, 15], strides = [1, 1]} : vector<4x256xf32> to vector<4x15xf32>
    %289 = vector.extract_strided_slice %275 {offsets = [0, 0], sizes = [4, 241], strides = [1, 1]} : vector<4x256xf32> to vector<4x241xf32>
    %290 = tpu.concatenate %288, %289 in 1 : vector<4x15xf32>, vector<4x241xf32> -> vector<4x256xf32>
    %291 = vector.extract_strided_slice %0 {offsets = [2, 0], sizes = [1, 256], strides = [1, 1]} : vector<9x256xf32> to vector<1x256xf32>
    %292 = vector.broadcast %291 : vector<1x256xf32> to vector<4x256xf32>
    %293 = arith.mulf %290, %292 : vector<4x256xf32>
    %294 = vector.extract_strided_slice %275 {offsets = [0, 255], sizes = [4, 1], strides = [1, 1]} : vector<4x256xf32> to vector<4x1xf32>
    %295 = vector.extract_strided_slice %275 {offsets = [0, 0], sizes = [4, 255], strides = [1, 1]} : vector<4x256xf32> to vector<4x255xf32>
    %296 = tpu.concatenate %294, %295 in 1 : vector<4x1xf32>, vector<4x255xf32> -> vector<4x256xf32>
    %297 = vector.extract_strided_slice %0 {offsets = [3, 0], sizes = [1, 256], strides = [1, 1]} : vector<9x256xf32> to vector<1x256xf32>
    %298 = vector.broadcast %297 : vector<1x256xf32> to vector<4x256xf32>
    %299 = arith.mulf %296, %298 : vector<4x256xf32>
    %300 = vector.extract_strided_slice %0 {offsets = [4, 0], sizes = [1, 256], strides = [1, 1]} : vector<9x256xf32> to vector<1x256xf32>
    %301 = vector.broadcast %300 : vector<1x256xf32> to vector<4x256xf32>
    %302 = arith.mulf %275, %301 : vector<4x256xf32>
    %303 = vector.extract_strided_slice %275 {offsets = [0, 1], sizes = [4, 255], strides = [1, 1]} : vector<4x256xf32> to vector<4x255xf32>
    %304 = vector.extract_strided_slice %275 {offsets = [0, 0], sizes = [4, 1], strides = [1, 1]} : vector<4x256xf32> to vector<4x1xf32>
    %305 = tpu.concatenate %303, %304 in 1 : vector<4x255xf32>, vector<4x1xf32> -> vector<4x256xf32>
    %306 = vector.extract_strided_slice %0 {offsets = [5, 0], sizes = [1, 256], strides = [1, 1]} : vector<9x256xf32> to vector<1x256xf32>
    %307 = vector.broadcast %306 : vector<1x256xf32> to vector<4x256xf32>
    %308 = arith.mulf %305, %307 : vector<4x256xf32>
    %309 = vector.extract_strided_slice %275 {offsets = [0, 15], sizes = [4, 241], strides = [1, 1]} : vector<4x256xf32> to vector<4x241xf32>
    %310 = vector.extract_strided_slice %275 {offsets = [0, 0], sizes = [4, 15], strides = [1, 1]} : vector<4x256xf32> to vector<4x15xf32>
    %311 = tpu.concatenate %309, %310 in 1 : vector<4x241xf32>, vector<4x15xf32> -> vector<4x256xf32>
    %312 = vector.extract_strided_slice %0 {offsets = [6, 0], sizes = [1, 256], strides = [1, 1]} : vector<9x256xf32> to vector<1x256xf32>
    %313 = vector.broadcast %312 : vector<1x256xf32> to vector<4x256xf32>
    %314 = arith.mulf %311, %313 : vector<4x256xf32>
    %315 = vector.extract_strided_slice %275 {offsets = [0, 16], sizes = [4, 240], strides = [1, 1]} : vector<4x256xf32> to vector<4x240xf32>
    %316 = vector.extract_strided_slice %275 {offsets = [0, 0], sizes = [4, 16], strides = [1, 1]} : vector<4x256xf32> to vector<4x16xf32>
    %317 = tpu.concatenate %315, %316 in 1 : vector<4x240xf32>, vector<4x16xf32> -> vector<4x256xf32>
    %318 = vector.extract_strided_slice %0 {offsets = [7, 0], sizes = [1, 256], strides = [1, 1]} : vector<9x256xf32> to vector<1x256xf32>
    %319 = vector.broadcast %318 : vector<1x256xf32> to vector<4x256xf32>
    %320 = arith.mulf %317, %319 : vector<4x256xf32>
    %321 = vector.extract_strided_slice %275 {offsets = [0, 17], sizes = [4, 239], strides = [1, 1]} : vector<4x256xf32> to vector<4x239xf32>
    %322 = vector.extract_strided_slice %275 {offsets = [0, 0], sizes = [4, 17], strides = [1, 1]} : vector<4x256xf32> to vector<4x17xf32>
    %323 = tpu.concatenate %321, %322 in 1 : vector<4x239xf32>, vector<4x17xf32> -> vector<4x256xf32>
    %324 = vector.extract_strided_slice %0 {offsets = [8, 0], sizes = [1, 256], strides = [1, 1]} : vector<9x256xf32> to vector<1x256xf32>
    %325 = vector.broadcast %324 : vector<1x256xf32> to vector<4x256xf32>
    %326 = arith.mulf %323, %325 : vector<4x256xf32>
    %327 = tpu.concatenate %281, %287, %293, %299, %302, %308, %314, %320, %326 in 0 : vector<4x256xf32>, vector<4x256xf32>, vector<4x256xf32>, vector<4x256xf32>, vector<4x256xf32>, vector<4x256xf32>, vector<4x256xf32>, vector<4x256xf32>, vector<4x256xf32> -> vector<36x256xf32>
    %cst_44 = arith.constant dense<0.000000e+00> : vector<4x256xf32>
    %328 = tpu.matmul %4, %327, %cst_44 {dimension_numbers = #tpu.dot_dimension_numbers<[1], [0], [0], [1], [0, 0, 1, 1], [], []>} : vector<4x36xf32>, vector<36x256xf32>, vector<4x256xf32> -> vector<4x256xf32>
    %329 = arith.index_cast %c0_i32_40 : i32 to index
    %c0_45 = arith.constant 0 : index
    %c0_46 = arith.constant 0 : index
    %330 = vector.load %arg11[%329, %c0_45, %c0_46] : memref<2x4x256xf32, #tpu.memory_space<vmem>>, vector<1x4x256xf32>
    %331 = vector.shape_cast %330 : vector<1x4x256xf32> to vector<4x256xf32>
    %332 = vector.shape_cast %328 : vector<4x256xf32> to vector<1x4x256xf32>
    tpu.vector_store %arg11[%329, %c0_45, %c0_46], %332 {strides = array<i32>} : memref<2x4x256xf32, #tpu.memory_space<vmem>>, vector<1x4x256xf32>,
    %c1_i32_47 = arith.constant 1 : i32
    %333 = arith.index_cast %c1_i32_47 : i32 to index
    %c0_48 = arith.constant 0 : index
    %c0_49 = arith.constant 0 : index
    %334 = vector.load %arg12[%333, %c0_48, %c0_49] : memref<2x4x256xf32, #tpu.memory_space<vmem>>, vector<1x4x256xf32>
    %335 = vector.shape_cast %334 : vector<1x4x256xf32> to vector<4x256xf32>
    %336 = vector.broadcast %262 : vector<4x1xf32> to vector<4x256xf32>
    %337 = arith.mulf %335, %336 : vector<4x256xf32>
    %338 = vector.broadcast %266 : vector<4x1xf32> to vector<4x256xf32>
    %339 = arith.addf %337, %338 : vector<4x256xf32>
    %cst_50 = arith.constant 0.000000e+00 : f32
    %340 = vector.broadcast %cst_50 : f32 to vector<4x256xf32>
    %341 = arith.maximumf %339, %340 : vector<4x256xf32>
    %342 = vector.extract_strided_slice %341 {offsets = [0, 239], sizes = [4, 17], strides = [1, 1]} : vector<4x256xf32> to vector<4x17xf32>
    %343 = vector.extract_strided_slice %341 {offsets = [0, 0], sizes = [4, 239], strides = [1, 1]} : vector<4x256xf32> to vector<4x239xf32>
    %344 = tpu.concatenate %342, %343 in 1 : vector<4x17xf32>, vector<4x239xf32> -> vector<4x256xf32>
    %345 = vector.extract_strided_slice %0 {offsets = [0, 0], sizes = [1, 256], strides = [1, 1]} : vector<9x256xf32> to vector<1x256xf32>
    %346 = vector.broadcast %345 : vector<1x256xf32> to vector<4x256xf32>
    %347 = arith.mulf %344, %346 : vector<4x256xf32>
    %348 = vector.extract_strided_slice %341 {offsets = [0, 240], sizes = [4, 16], strides = [1, 1]} : vector<4x256xf32> to vector<4x16xf32>
    %349 = vector.extract_strided_slice %341 {offsets = [0, 0], sizes = [4, 240], strides = [1, 1]} : vector<4x256xf32> to vector<4x240xf32>
    %350 = tpu.concatenate %348, %349 in 1 : vector<4x16xf32>, vector<4x240xf32> -> vector<4x256xf32>
    %351 = vector.extract_strided_slice %0 {offsets = [1, 0], sizes = [1, 256], strides = [1, 1]} : vector<9x256xf32> to vector<1x256xf32>
    %352 = vector.broadcast %351 : vector<1x256xf32> to vector<4x256xf32>
    %353 = arith.mulf %350, %352 : vector<4x256xf32>
    %354 = vector.extract_strided_slice %341 {offsets = [0, 241], sizes = [4, 15], strides = [1, 1]} : vector<4x256xf32> to vector<4x15xf32>
    %355 = vector.extract_strided_slice %341 {offsets = [0, 0], sizes = [4, 241], strides = [1, 1]} : vector<4x256xf32> to vector<4x241xf32>
    %356 = tpu.concatenate %354, %355 in 1 : vector<4x15xf32>, vector<4x241xf32> -> vector<4x256xf32>
    %357 = vector.extract_strided_slice %0 {offsets = [2, 0], sizes = [1, 256], strides = [1, 1]} : vector<9x256xf32> to vector<1x256xf32>
    %358 = vector.broadcast %357 : vector<1x256xf32> to vector<4x256xf32>
    %359 = arith.mulf %356, %358 : vector<4x256xf32>
    %360 = vector.extract_strided_slice %341 {offsets = [0, 255], sizes = [4, 1], strides = [1, 1]} : vector<4x256xf32> to vector<4x1xf32>
    %361 = vector.extract_strided_slice %341 {offsets = [0, 0], sizes = [4, 255], strides = [1, 1]} : vector<4x256xf32> to vector<4x255xf32>
    %362 = tpu.concatenate %360, %361 in 1 : vector<4x1xf32>, vector<4x255xf32> -> vector<4x256xf32>
    %363 = vector.extract_strided_slice %0 {offsets = [3, 0], sizes = [1, 256], strides = [1, 1]} : vector<9x256xf32> to vector<1x256xf32>
    %364 = vector.broadcast %363 : vector<1x256xf32> to vector<4x256xf32>
    %365 = arith.mulf %362, %364 : vector<4x256xf32>
    %366 = vector.extract_strided_slice %0 {offsets = [4, 0], sizes = [1, 256], strides = [1, 1]} : vector<9x256xf32> to vector<1x256xf32>
    %367 = vector.broadcast %366 : vector<1x256xf32> to vector<4x256xf32>
    %368 = arith.mulf %341, %367 : vector<4x256xf32>
    %369 = vector.extract_strided_slice %341 {offsets = [0, 1], sizes = [4, 255], strides = [1, 1]} : vector<4x256xf32> to vector<4x255xf32>
    %370 = vector.extract_strided_slice %341 {offsets = [0, 0], sizes = [4, 1], strides = [1, 1]} : vector<4x256xf32> to vector<4x1xf32>
    %371 = tpu.concatenate %369, %370 in 1 : vector<4x255xf32>, vector<4x1xf32> -> vector<4x256xf32>
    %372 = vector.extract_strided_slice %0 {offsets = [5, 0], sizes = [1, 256], strides = [1, 1]} : vector<9x256xf32> to vector<1x256xf32>
    %373 = vector.broadcast %372 : vector<1x256xf32> to vector<4x256xf32>
    %374 = arith.mulf %371, %373 : vector<4x256xf32>
    %375 = vector.extract_strided_slice %341 {offsets = [0, 15], sizes = [4, 241], strides = [1, 1]} : vector<4x256xf32> to vector<4x241xf32>
    %376 = vector.extract_strided_slice %341 {offsets = [0, 0], sizes = [4, 15], strides = [1, 1]} : vector<4x256xf32> to vector<4x15xf32>
    %377 = tpu.concatenate %375, %376 in 1 : vector<4x241xf32>, vector<4x15xf32> -> vector<4x256xf32>
    %378 = vector.extract_strided_slice %0 {offsets = [6, 0], sizes = [1, 256], strides = [1, 1]} : vector<9x256xf32> to vector<1x256xf32>
    %379 = vector.broadcast %378 : vector<1x256xf32> to vector<4x256xf32>
    %380 = arith.mulf %377, %379 : vector<4x256xf32>
    %381 = vector.extract_strided_slice %341 {offsets = [0, 16], sizes = [4, 240], strides = [1, 1]} : vector<4x256xf32> to vector<4x240xf32>
    %382 = vector.extract_strided_slice %341 {offsets = [0, 0], sizes = [4, 16], strides = [1, 1]} : vector<4x256xf32> to vector<4x16xf32>
    %383 = tpu.concatenate %381, %382 in 1 : vector<4x240xf32>, vector<4x16xf32> -> vector<4x256xf32>
    %384 = vector.extract_strided_slice %0 {offsets = [7, 0], sizes = [1, 256], strides = [1, 1]} : vector<9x256xf32> to vector<1x256xf32>
    %385 = vector.broadcast %384 : vector<1x256xf32> to vector<4x256xf32>
    %386 = arith.mulf %383, %385 : vector<4x256xf32>
    %387 = vector.extract_strided_slice %341 {offsets = [0, 17], sizes = [4, 239], strides = [1, 1]} : vector<4x256xf32> to vector<4x239xf32>
    %388 = vector.extract_strided_slice %341 {offsets = [0, 0], sizes = [4, 17], strides = [1, 1]} : vector<4x256xf32> to vector<4x17xf32>
    %389 = tpu.concatenate %387, %388 in 1 : vector<4x239xf32>, vector<4x17xf32> -> vector<4x256xf32>
    %390 = vector.extract_strided_slice %0 {offsets = [8, 0], sizes = [1, 256], strides = [1, 1]} : vector<9x256xf32> to vector<1x256xf32>
    %391 = vector.broadcast %390 : vector<1x256xf32> to vector<4x256xf32>
    %392 = arith.mulf %389, %391 : vector<4x256xf32>
    %393 = tpu.concatenate %347, %353, %359, %365, %368, %374, %380, %386, %392 in 0 : vector<4x256xf32>, vector<4x256xf32>, vector<4x256xf32>, vector<4x256xf32>, vector<4x256xf32>, vector<4x256xf32>, vector<4x256xf32>, vector<4x256xf32>, vector<4x256xf32> -> vector<36x256xf32>
    %cst_51 = arith.constant dense<0.000000e+00> : vector<4x256xf32>
    %394 = tpu.matmul %4, %393, %cst_51 {dimension_numbers = #tpu.dot_dimension_numbers<[1], [0], [0], [1], [0, 0, 1, 1], [], []>} : vector<4x36xf32>, vector<36x256xf32>, vector<4x256xf32> -> vector<4x256xf32>
    %395 = arith.index_cast %c1_i32_47 : i32 to index
    %c0_52 = arith.constant 0 : index
    %c0_53 = arith.constant 0 : index
    %396 = vector.load %arg11[%395, %c0_52, %c0_53] : memref<2x4x256xf32, #tpu.memory_space<vmem>>, vector<1x4x256xf32>
    %397 = vector.shape_cast %396 : vector<1x4x256xf32> to vector<4x256xf32>
    %398 = vector.shape_cast %394 : vector<4x256xf32> to vector<1x4x256xf32>
    tpu.vector_store %arg11[%395, %c0_52, %c0_53], %398 {strides = array<i32>} : memref<2x4x256xf32, #tpu.memory_space<vmem>>, vector<1x4x256xf32>,
    %c2_i32_54 = arith.constant 2 : i32
    %c0_55 = arith.constant 0 : index
    %c0_56 = arith.constant 0 : index
    %c0_57 = arith.constant 0 : index
    %399 = vector.load %arg11[%c0_55, %c0_56, %c0_57] : memref<2x4x256xf32, #tpu.memory_space<vmem>>, vector<2x4x256xf32>
    %cst_58 = arith.constant dense<0.000000e+00> : vector<2x4xf32>
    %400 = vector.multi_reduction <add>, %399, %cst_58 [2] : vector<2x4x256xf32> to vector<2x4xf32>
    %401 = vector.shape_cast %400 : vector<2x4xf32> to vector<2x4x1xf32>
    %cst_59 = arith.constant dense<0.000000e+00> : vector<4x1xf32>
    %402 = vector.multi_reduction <add>, %401, %cst_59 [0] : vector<2x4x1xf32> to vector<4x1xf32>
    %403 = vector.shape_cast %402 : vector<4x1xf32> to vector<1x4x1xf32>
    %cst_60 = arith.constant 5.120000e+02 : f32
    %404 = vector.broadcast %cst_60 : f32 to vector<1x4x1xf32>
    %405 = arith.divf %403, %404 : vector<1x4x1xf32>
    %406 = vector.broadcast %405 : vector<1x4x1xf32> to vector<2x4x256xf32>
    %407 = arith.subf %399, %406 : vector<2x4x256xf32>
    %408 = arith.mulf %407, %407 : vector<2x4x256xf32>
    %cst_61 = arith.constant dense<0.000000e+00> : vector<2x4xf32>
    %409 = vector.multi_reduction <add>, %408, %cst_61 [2] : vector<2x4x256xf32> to vector<2x4xf32>
    %410 = vector.shape_cast %409 : vector<2x4xf32> to vector<2x4x1xf32>
    %cst_62 = arith.constant dense<0.000000e+00> : vector<4x1xf32>
    %411 = vector.multi_reduction <add>, %410, %cst_62 [0] : vector<2x4x1xf32> to vector<4x1xf32>
    %412 = vector.shape_cast %411 : vector<4x1xf32> to vector<1x4x1xf32>
    %cst_63 = arith.constant 5.120000e+02 : f32
    %413 = vector.broadcast %cst_63 : f32 to vector<1x4x1xf32>
    %414 = arith.divf %412, %413 : vector<1x4x1xf32>
    %c0_64 = arith.constant 0 : index
    %c0_65 = arith.constant 0 : index
    %415 = vector.load %arg9[%c0_64, %c0_65] : memref<4x1xf32, #tpu.memory_space<vmem>>, vector<4x1xf32>
    %416 = vector.shape_cast %414 : vector<1x4x1xf32> to vector<4x1xf32>
    %cst_66 = arith.constant 9.99999974E-6 : f32
    %417 = vector.broadcast %cst_66 : f32 to vector<4x1xf32>
    %418 = arith.addf %416, %417 : vector<4x1xf32>
    %419 = math.rsqrt %418 : vector<4x1xf32>
    %420 = arith.mulf %415, %419 : vector<4x1xf32>
    %c0_67 = arith.constant 0 : index
    %c0_68 = arith.constant 0 : index
    %421 = vector.load %arg10[%c0_67, %c0_68] : memref<4x1xf32, #tpu.memory_space<vmem>>, vector<4x1xf32>
    %422 = vector.shape_cast %405 : vector<1x4x1xf32> to vector<4x1xf32>
    %423 = arith.mulf %422, %420 : vector<4x1xf32>
    %424 = arith.subf %421, %423 : vector<4x1xf32>
    %425 = vector.shape_cast %420 : vector<4x1xf32> to vector<1x4x1xf32>
    %426 = vector.broadcast %425 : vector<1x4x1xf32> to vector<2x4x256xf32>
    %427 = arith.mulf %399, %426 : vector<2x4x256xf32>
    %428 = vector.shape_cast %424 : vector<4x1xf32> to vector<1x4x1xf32>
    %429 = vector.broadcast %428 : vector<1x4x1xf32> to vector<2x4x256xf32>
    %430 = arith.addf %427, %429 : vector<2x4x256xf32>
    %cst_69 = arith.constant 0.000000e+00 : f32
    %431 = vector.broadcast %cst_69 : f32 to vector<2x4x256xf32>
    %432 = arith.maximumf %430, %431 : vector<2x4x256xf32>
    %c0_70 = arith.constant 0 : index
    %c0_71 = arith.constant 0 : index
    %c0_72 = arith.constant 0 : index
    %433 = vector.load %arg11[%c0_70, %c0_71, %c0_72] : memref<2x4x256xf32, #tpu.memory_space<vmem>>, vector<2x4x256xf32>
    tpu.vector_store %arg11[%c0_70, %c0_71, %c0_72], %432 {strides = array<i32>} : memref<2x4x256xf32, #tpu.memory_space<vmem>>, vector<2x4x256xf32>,
    return
  }
}

</mosaic_0001>

<bundles_post_ra>
// kernel: tpu_custom_call.1
= control target key start
LH: loop header
LB: loop body
LE: loop exit
PB: predicated region body
PF: predicated region fallthrough
CT: control target
= control target key end

     0   :  { %16 = vsyncpa [#allocation4], 0  ;;  %s2850_s0 = inlined_call_operand.hbm [shape: f32[2,8,64], index: 0, kind: input, shape index: {}]   ;;  %s2851_s1 = inlined_call_operand.hbm [shape: f32[2,4,256], index: 1, kind: input, shape index: {}]   ;;  %s2852_s2 = inlined_call_operand.hbm [shape: f32[64,256], index: 2, kind: input, shape index: {}]   ;;  %s2853_s3 = inlined_call_operand.hbm [shape: f32[9,256], index: 3, kind: input, shape index: {}]   ;;  %s2854_s4 = inlined_call_operand.vmem [shape: f32[4,72], index: 4, kind: input, shape index: {}]   ;;  %s2855_s5 = inlined_call_operand.vmem [shape: f32[4,36], index: 5, kind: input, shape index: {}]   ;;  %s2856_s6 = inlined_call_operand.vmem [shape: f32[4,36], index: 6, kind: input, shape index: {}]   ;;  %s2857_s7 = inlined_call_operand.vmem [shape: f32[4,1], index: 7, kind: input, shape index: {}]   ;;  %s2858_s8 = inlined_call_operand.vmem [shape: f32[4,1], index: 8, kind: input, shape index: {}]   ;;  %s2859_s9 = inlined_call_operand.vmem [shape: f32[4,1], index: 9, kind: input, shape index: {}]   ;;  %s2860_s10 = inlined_call_operand.vmem [shape: f32[4,1], index: 10, kind: input, shape index: {}]   ;;  %s2861_s11 = inlined_call_operand.hbm [shape: f32[2,4,256], index: 11, kind: output, shape index: {}]  }
   0x1   :  { %17 = vsyncpa [#allocation7], 0 }
   0x2   :  { %18 = vsyncpa [#allocation10], 0 }
   0x3   :  { %19 = vsyncpa [#allocation5], 0  ;;  %s37_s19 = sshll.u32 %s2851_s1, 4  ;;  %s1899_s20 = smov [#allocation6]   ;;  %s38_s19 = int_to_ptr.hbm [resolvable:$true] %s37_s19 }
   0x4   :  { %s39_s21 = sshll.u32 %s1899_s20, 4  ;;  %s24_s24 = sshll.u32 %s2850_s0, 4  ;;  %s40_s21 = int_to_ptr.vmem [resolvable:$true] %s39_s21  ;;  %s25_s24 = int_to_ptr.hbm [resolvable:$true] %s24_s24 }
   0x5   :  { %s1900_s25 = smov 128   ;;  %s1901_s26 = smov 8  }
   0x6   :  { %45 = dma.hbm_to_vmem [thread:$0]  %s38_s19, 256, %s40_s21, [#allocation7], %s1900_s25, %s1900_s25, %s1901_s26  }
   0x7   :  { %s1902_s27 = smov [#allocation3]   ;;  %s50_s1 = sshll.u32 %s2852_s2, 4  ;;  %s51_s1 = int_to_ptr.hbm [resolvable:$true] %s50_s1 }
   0x8   :  { %s26_s28 = sshll.u32 %s1902_s27, 4  ;;  %s1903_s0 = smov [#allocation8]   ;;  %s27_s28 = int_to_ptr.vmem [resolvable:$true] %s26_s28 }
   0x9   :  { %32 = dma.hbm_to_vmem [thread:$0]  %s25_s24, 256, %s27_s28, [#allocation4], %s1900_s25, %s1900_s25, %s1901_s26  }
   0xa   :  { %s52_s12 = sshll.u32 %s1903_s0, 4  ;;  %s63_s15 = sshll.u32 %s2853_s3, 4  ;;  %s53_s12 = int_to_ptr.vmem [resolvable:$true] %s52_s12  ;;  %s64_s15 = int_to_ptr.hbm [resolvable:$true] %s63_s15 }
   0xb   :  { %s1904_s16 = smov 256   ;;  %s1905_s17 = smov 16  }
   0xc   :  { %58 = dma.hbm_to_vmem [thread:$0]  %s51_s1, 2048, %s53_s12, [#allocation7], %s1904_s16, %s1904_s16, %s1905_s17  }
   0xd   :  { %s1906_s18 = smov [#allocation9]  }
   0xe   :  { %s65_s2 = sshll.u32 %s1906_s18, 4  ;;  %s66_s2 = int_to_ptr.vmem [resolvable:$true] %s65_s2 }
   0xf   :  { %71 = dma.hbm_to_vmem [thread:$0]  %s64_s15, 512, %s66_s2, [#allocation10], %s1904_s16, %s1904_s16, %s1905_s17  }
  0x10   :  { %1891 = dma.done.wait [#allocation4], 256  }
  0x11   :  { %1892 = vsyncadd [#allocation4], 4294967040 }
  0x12   :  { %1893 = dma.done.wait [#allocation7], 2304  }
  0x13   :  { %1894 = vsyncadd [#allocation7], 4294964992 }
  0x14   :  { %1895 = dma.done.wait [#allocation10], 512  }
  0x15   :  { %1896 = vsyncadd [#allocation10], 4294966784  ;;  %v120_v0 = vld [vmem:[#allocation8 + $0x70] sm:$0xff]  ;;  %v121_v1 = vld [vmem:[#allocation8 + $0x78] sm:$0xff]  ;;  %vm126_vm0 = vcmask 523264   ;;  %s1907_s3 = smov 17  }
  0x16   :  { %v118_v2 = vld [vmem:[#allocation8 + $0x60] sm:$0xff]  ;;  %138 = vmatpush.msra.mxu0 %v120_v0  ;;  %158 = vmatpush.msra.mxu1 %v121_v1  ;;  %v119_v3 = vld [vmem:[#allocation8 + $0x68] sm:$0xff]  ;;  %v116_v4 = vld [vmem:[#allocation8 + $0x50] sm:$0xff]  ;;  %s1908_s19 = smov 15   ;;  %s1909_s20 = smov 1   ;;  %vm365_vm1 = vcmask 1043456  }
  0x17   :  { %v117_v5 = vld [vmem:[#allocation8 + $0x58] sm:$0xff]  ;;  %v114_v6 = vld [vmem:[#allocation8 + $0x40] sm:$0xff]  ;;  %v115_v7 = vld [vmem:[#allocation8 + $0x48] sm:$0xff]  ;;  %s1910_s21 = smov 127   ;;  %s1911_s22 = smov 113   ;;  %vm191_vm2 = vcmask 130048  }
  0x18   :  { %139 = vmatpush.msra.mxu0 %v118_v2  ;;  %159 = vmatpush.msra.mxu1 %v119_v3  ;;  %v112_v8 = vld [vmem:[#allocation8 + $0x30] sm:$0xff]  ;;  %v113_v9 = vld [vmem:[#allocation8 + $0x38] sm:$0xff]  ;;  %v110_v11 = vld [vmem:[#allocation8 + $0x20] sm:$0xff]  ;;  %s1912_s23 = smov 112   ;;  %s1913_s24 = smov 111   ;;  %vm177_vm3 = vcmask 138240  }
  0x19   :  { %v1998_v10 = vld [vmem:[#allocation6] sm:$0xff]  ;;  %v111_v12 = vld [vmem:[#allocation8 + $0x28] sm:$0xff]  ;;  %v109_v14 = vld [vmem:[#allocation8 + $0x18] sm:$0xff]  ;;  %vm278_vm4 = vcmask 908288   ;;  %vm219_vm5 = vcmask 7168   ;;  %vm236_vm6 = vcmask 1039360  }
  0x1a   :  { %140 = vmatpush.msra.mxu0 %v116_v4  ;;  %160 = vmatpush.msra.mxu1 %v117_v5  ;;  %290 = vst [vmem:[#allocation1] ss:$2 sm:$0xff] %v1998_v10  ;;  %v108_v13 = vld [vmem:[#allocation8 + $0x10] sm:$0xff]  ;;  %v106_v15 = vld [vmem:[#allocation8] sm:$0xff]  ;;  %v107_v16 = vld [vmem:[#allocation8 + $0x8] sm:$0xff]  ;;  %vm250_vm7 = vcmask 924672  }
  0x1b   :  { %v125_v17 = vld [vmem:[#allocation3] sm:$0xff]  ;;  %v580_v21 = vld [vmem:[#allocation3 + $0x8] sm:$0xff]  ;;  %v2061_v51 = vld [vmem:[#allocation6 + $0x8] sm:$0xff]  ;;  %vm264_vm8 = vcmask 916480   ;;  %vm205_vm9 = vcmask 121856   ;;  %vm479_vm10 = vcmask 293888  }
  0x1c   :  { %141 = vmatpush.msra.mxu0 %v114_v6  ;;  %161 = vmatpush.msra.mxu1 %v115_v7  ;;  %v2038_v39 = vld [vmem:[#allocation9 + $0x8] sm:$0xff]  ;;  %v2045_v42 = vld [vmem:[#allocation9] sm:$0xff]  ;;  %vm529_vm11 = vcmask 588800  }
  0x1d   :  { %v2043_v41 = vperm.slane %v2038_v39, 4  ;;  %v2048_v43 = vperm.slane %v2045_v42, 4 }
  0x1e   :  { %142 = vmatpush.msra.mxu0 %v112_v8  ;;  %162 = vmatpush.msra.mxu1 %v113_v9 }
  0x1f   :  { %v364_v44 = vrot.slane %v2043_v41, 4 }
  0x20   :  { %143 = vmatpush.msra.mxu0 %v110_v11  ;;  %163 = vmatpush.msra.mxu1 %v111_v12 }
  0x21   :  { %v291_v18 = vld.sshfl [vmem:[#allocation1 + $0x8] sm:$0xff pattern:$0x75316420]  ;;  %v2056_v47 = vsel %vm365_vm1, %v2048_v43, %v364_v44 }
  0x22   :  { %144 = vmatpush.msra.mxu0 %v108_v13  ;;  %164 = vmatpush.msra.mxu1 %v109_v14  ;;  %295 = vst [vmem:[#allocation1] ss:$2 sm:$0xff] %v1998_v10  ;;  %v368_v48 = vmul.f32 %v2056_v47, %v1998_v10 }
  0x23   :  { %292 = vrot.lane.b32.xlu1 %v291_v18, %s1907_s3 }
  0x24   :  { %145 = vmatpush.msra.mxu0 %v106_v15  ;;  %165 = vmatpush.msra.mxu1 %v107_v16 }
  0x25   :  { %1715 = vmatmul.msk.f32.vlgmr.msra.gmra.mxu0 %vm126_vm0, %v125_v17  ;;  %1716 = vmatmul.msk.f32.vlgmr.msra.gmra.mxu1 %vm126_vm0, %v125_v17 }
  0x26   :  { %592 = vmatpush.msrb.mxu0 %v120_v0  ;;  %612 = vmatpush.msrb.mxu1 %v121_v1  ;;  %v2109_v0 = vperm.slane %v2045_v42, 1 }
  0x28   :  { %593 = vmatpush.msrb.mxu0 %v118_v2  ;;  %613 = vmatpush.msrb.mxu1 %v119_v3 }
  0x29   :  { %v296_v19 = vld.sshfl [vmem:[#allocation1] sm:$0xff pattern:$0x75316420]  ;;  %v297_v20 = vld.sshfl [vmem:[#allocation1 + $0x8] sm:$0xff pattern:$0x75316420] }
  0x2a   :  { %594 = vmatpush.msrb.mxu0 %v116_v4  ;;  %614 = vmatpush.msrb.mxu1 %v117_v5  ;;  %308 = vst [vmem:[#allocation1] ss:$2 sm:$0xff] %v1998_v10 }
  0x2b   :  { %298 = vrot.lane.b32.xlu0 %v296_v19, %s1907_s3  ;;  %300 = vrot.lane.b32.xlu1 %v297_v20, %s1907_s3 }
  0x2c   :  { %595 = vmatpush.msrb.mxu0 %v114_v6  ;;  %615 = vmatpush.msrb.mxu1 %v115_v7  ;;  %v2125_v7 = vperm.slane %v2045_v42, 0 }
  0x2e   :  { %596 = vmatpush.msrb.mxu0 %v112_v8  ;;  %616 = vmatpush.msrb.mxu1 %v113_v9 }
  0x30   :  { %597 = vmatpush.msrb.mxu0 %v110_v11  ;;  %617 = vmatpush.msrb.mxu1 %v111_v12 }
  0x31   :  { %v309_v22 = vld.sshfl [vmem:[#allocation1 + $0x8] sm:$0xff pattern:$0x75316420] }
  0x32   :  { %598 = vmatpush.msrb.mxu0 %v108_v13  ;;  %618 = vmatpush.msrb.mxu1 %v109_v14  ;;  %313 = vst [vmem:[#allocation1] ss:$2 sm:$0xff] %v1998_v10 }
  0x33   :  { %310 = vrot.lane.b32.xlu2 %v309_v22, %s1905_s17 }
  0x34   :  { %599 = vmatpush.msrb.mxu0 %v106_v15  ;;  %619 = vmatpush.msrb.mxu1 %v107_v16 }
  0x35   :  { %1723 = vmatmul.msk.f32.vlgmr.msrb.gmra.mxu0 %vm126_vm0, %v580_v21  ;;  %1724 = vmatmul.msk.f32.vlgmr.msrb.gmra.mxu1 %vm126_vm0, %v580_v21 }
  0x39   :  { %v315_v23 = vld.sshfl [vmem:[#allocation1 + $0x8] sm:$0xff pattern:$0x75316420]  ;;  %v314_v24 = vld.sshfl [vmem:[#allocation1] sm:$0xff pattern:$0x75316420] }
  0x3a   :  { %318 = vrot.lane.b32.xlu0 %v315_v23, %s1905_s17  ;;  %326 = vst [vmem:[#allocation1] ss:$2 sm:$0xff] %v1998_v10 }
  0x3b   :  { %316 = vrot.lane.b32.xlu2 %v314_v24, %s1905_s17 }
  0x41   :  { %v327_v25 = vld.sshfl [vmem:[#allocation1 + $0x8] sm:$0xff pattern:$0x75316420] }
  0x42   :  { %328 = vrot.lane.b32.xlu0 %v327_v25, %s1908_s19  ;;  %331 = vst [vmem:[#allocation1] ss:$2 sm:$0xff] %v1998_v10 }
  0x49   :  { %v332_v26 = vld.sshfl [vmem:[#allocation1] sm:$0xff pattern:$0x75316420]  ;;  %v333_v27 = vld.sshfl [vmem:[#allocation1 + $0x8] sm:$0xff pattern:$0x75316420] }
  0x4a   :  { %344 = vst [vmem:[#allocation1] ss:$2 sm:$0xff] %v1998_v10  ;;  %334 = vrot.lane.b32.xlu1 %v332_v26, %s1908_s19  ;;  %336 = vrot.lane.b32.xlu2 %v333_v27, %s1908_s19 }
  0x51   :  { %v345_v28 = vld.sshfl [vmem:[#allocation1 + $0x8] sm:$0xff pattern:$0x75316420] }
  0x52   :  { %346 = vrot.lane.b32.xlu0 %v345_v28, %s1909_s20  ;;  %349 = vst [vmem:[#allocation1] ss:$2 sm:$0xff] %v1998_v10 }
  0x59   :  { %v351_v29 = vld.sshfl [vmem:[#allocation1 + $0x8] sm:$0xff pattern:$0x75316420]  ;;  %v350_v30 = vld.sshfl [vmem:[#allocation1] sm:$0xff pattern:$0x75316420] }
  0x5a   :  { %354 = vrot.lane.b32.xlu0 %v351_v29, %s1909_s20  ;;  %369 = vst [vmem:[#allocation1] ss:$2 sm:$0xff] %v1998_v10  ;;  %352 = vrot.lane.b32.xlu2 %v350_v30, %s1909_s20 }
  0x61   :  { %v371_v31 = vld.sshfl [vmem:[#allocation1 + $0x8] sm:$0xff pattern:$0x75316420]  ;;  %v370_v32 = vld.sshfl [vmem:[#allocation1] sm:$0xff pattern:$0x75316420] }
  0x62   :  { %374 = vrot.lane.b32.xlu0 %v371_v31, %s1910_s21  ;;  %379 = vst [vmem:[#allocation1] ss:$2 sm:$0xff] %v1998_v10  ;;  %372 = vrot.lane.b32.xlu1 %v370_v32, %s1910_s21 }
  0x69   :  { %v380_v33 = vld.sshfl [vmem:[#allocation1] sm:$0xff pattern:$0x75316420] }
  0x6a   :  { %387 = vst [vmem:[#allocation1] ss:$2 sm:$0xff] %v1998_v10  ;;  %381 = vrot.lane.b32.xlu1 %v380_v33, %s1910_s21 }
  0x71   :  { %v388_v34 = vld.sshfl [vmem:[#allocation1] sm:$0xff pattern:$0x75316420]  ;;  %v389_v35 = vld.sshfl [vmem:[#allocation1 + $0x8] sm:$0xff pattern:$0x75316420] }
  0x72   :  { %397 = vst [vmem:[#allocation1] ss:$2 sm:$0xff] %v1998_v10  ;;  %392 = vrot.lane.b32.xlu2 %v389_v35, %s1911_s22  ;;  %v2201_v35 = vld [vmem:[#allocation9 + $0x18] ss:$0 sm:$0xff] }
  0x79   :  { %v398_v36 = vld.sshfl [vmem:[#allocation1] sm:$0xff pattern:$0x75316420] }
  0x7a   :  { %399 = vrot.lane.b32.xlu0 %v398_v36, %s1911_s22  ;;  %405 = vst [vmem:[#allocation1] ss:$2 sm:$0xff] %v1998_v10  ;;  %390 = vrot.lane.b32.xlu2 %v388_v34, %s1911_s22 }
  0x81   :  { %v407_v37 = vld.sshfl [vmem:[#allocation1 + $0x8] sm:$0xff pattern:$0x75316420]  ;;  %v406_v38 = vld.sshfl [vmem:[#allocation1] sm:$0xff pattern:$0x75316420] }
  0x82   :  { %410 = vrot.lane.b32.xlu0 %v407_v37, %s1912_s23  ;;  %408 = vrot.lane.b32.xlu1 %v406_v38, %s1912_s23  ;;  %415 = vst [vmem:[#allocation1] ss:$2 sm:$0xff] %v1998_v10 }
  0x89   :  { %v416_v40 = vld.sshfl [vmem:[#allocation1] sm:$0xff pattern:$0x75316420] }
  0x8a   :  { %417 = vrot.lane.b32.xlu0 %v416_v40, %s1912_s23  ;;  %423 = vst [vmem:[#allocation1] ss:$2 sm:$0xff] %v1998_v10  ;;  %v2206_v40 = vperm.slane %v2038_v39, 5 }
  0x8d   :  { %v311_v50 = vpop.permute.xlu2 %310 }
  0x91   :  { %v424_v45 = vld.sshfl [vmem:[#allocation1] sm:$0xff pattern:$0x75316420]  ;;  %v425_v46 = vld.sshfl [vmem:[#allocation1 + $0x8] sm:$0xff pattern:$0x75316420] }
  0x92   :  { %426 = vrot.lane.b32.xlu1 %v424_v45, %s1913_s24  ;;  %428 = vrot.lane.b32.xlu2 %v425_v46, %s1913_s24  ;;  %433 = vst [vmem:[#allocation1] ss:$2 sm:$0xff] %v1998_v10  ;;  %v2213_v46 = vperm.slane %v2038_v39, 1 }
  0x95   :  { %v2077_v56 = vpop.permute.xlu2 %316  ;;  %v293_v6 = vpop.permute.xlu1 %292 }
  0x96   :  { %v323_v57 = vsel %vm191_vm2, %v311_v50, %v2077_v56 }
  0x97   :  { %v324_v1 = vmul.f32 %v323_v57, %v2109_v0 }
  0x99   :  { %v434_v49 = vld.sshfl [vmem:[#allocation1] sm:$0xff pattern:$0x75316420]  ;;  %v443_v5 = vrot.slane %v324_v1, 4  ;;  %v2239_v1 = vperm.slane %v2045_v42, 7 }
  0x9a   :  { %435 = vrot.lane.b32.xlu2 %v434_v49, %s1913_s24  ;;  %454 = vst [vmem:[#allocation1] ss:$2 sm:$0xff] %v368_v48  ;;  %v2219_v49 = vperm.slane %v2038_v39, 3 }
  0x9d   :  { %v2089_v59 = vpop.permute.xlu0 %298  ;;  %v2157_v19 = vpop.permute.xlu1 %300 }
  0x9e   :  { %v305_v8 = vsel %vm177_vm3, %v293_v6, %v2089_v59 }
  0x9f   :  { %v306_v11 = vmul.f32 %v305_v8, %v2125_v7 }
  0xa1   :  { %v2071_v54 = vld.sshfl [vmem:[#allocation1] sm:$0xff pattern:$0x75316420]  ;;  %v2073_v55 = vld.sshfl [vmem:[#allocation1 + $0x8] sm:$0xff pattern:$0x75316420]  ;;  %v2137_v13 = vsel %vm365_vm1, %v306_v11, %v443_v5 }
  0xa2   :  { %v2063_v52 = vpop.f32.mrf.mxu0  ;;  %v2065_v53 = vpop.f32.mrf.mxu1  ;;  %719 = vst [vmem:[#allocation1] ss:$2 sm:$0xff] %v2061_v51 }
  0xa3   :  { %262 = vrot.lane.b32.xlu0 %v2065_v53, %s1912_s23  ;;  %274 = vrot.lane.b32.xlu1 %v2063_v52, %s1913_s24 }
  0xa4   :  { %260 = vrot.lane.b32.xlu2 %v2063_v52, %s1912_s23  ;;  %v2131_v10 = vpop.permute.xlu2 %336 }
  0xa9   :  { %v720_v58 = vld.sshfl [vmem:[#allocation1 + $0x8] sm:$0xff pattern:$0x75316420] }
  0xaa   :  { %724 = vst [vmem:[#allocation1] ss:$2 sm:$0xff] %v2061_v51 }
  0xab   :  { %246 = vrot.lane.b32.xlu0 %v2063_v52, %s1911_s22  ;;  %276 = vrot.lane.b32.xlu1 %v2065_v53, %s1913_s24 }
  0xac   :  { %234 = vrot.lane.b32.xlu2 %v2065_v53, %s1910_s21  ;;  %v2106_v63 = vpop.permute.xlu0 %318 }
  0xad   :  { %v320_v48 = vsel %vm191_vm2, %v2077_v56, %v2106_v63  ;;  %v2231_v56 = vperm.slane %v2038_v39, 7 }
  0xae   :  { %v325_v6 = vmul.f32 %v320_v48, %v2213_v46 }
  0xb1   :  { %v725_v60 = vld.sshfl [vmem:[#allocation1] sm:$0xff pattern:$0x75316420]  ;;  %v726_v61 = vld.sshfl [vmem:[#allocation1 + $0x8] sm:$0xff pattern:$0x75316420] }
  0xb2   :  { %737 = vst [vmem:[#allocation1] ss:$2 sm:$0xff] %v2061_v51  ;;  %v2113_v2 = vpop.f32.mrf.mxu0  ;;  %v2134_v12 = vpop.f32.mrf.mxu1 }
  0xb3   :  { %217 = vrot.lane.b32.xlu0 %v2063_v52, %s1909_s20  ;;  %248 = vrot.lane.b32.xlu1 %v2065_v53, %s1911_s22 }
  0xb4   :  { %214 = vrot.lane.b32.xlu2 %v2065_v53, %s1909_s20  ;;  %v2129_v9 = vpop.permute.xlu0 %328  ;;  %v2148_v16 = vpop.permute.xlu2 %352 }
  0xb9   :  { %v2102_v62 = vld.sshfl [vmem:[#allocation1 + $0x8] sm:$0xff pattern:$0x75316420] }
  0xba   :  { %742 = vst [vmem:[#allocation1] ss:$2 sm:$0xff] %v2061_v51 }
  0xbb   :  { %186 = vrot.lane.b32.xlu0 %v2065_v53, %s1905_s17  ;;  %232 = vrot.lane.b32.xlu1 %v2063_v52, %s1910_s21 }
  0xbc   :  { %203 = vrot.lane.b32.xlu2 %v2063_v52, %s1908_s19  ;;  %v2169_v23 = vpop.permute.xlu1 %334 }
  0xc1   :  { %v743_v3 = vld.sshfl [vmem:[#allocation1] sm:$0xff pattern:$0x75316420]  ;;  %v2119_v4 = vld.sshfl [vmem:[#allocation1 + $0x8] sm:$0xff pattern:$0x75316420] }
  0xc2   :  { %755 = vst [vmem:[#allocation1] ss:$2 sm:$0xff] %v2061_v51 }
  0xc3   :  { %171 = vrot.lane.b32.xlu0 %v2065_v53, %s1907_s3  ;;  %200 = vrot.lane.b32.xlu1 %v2065_v53, %s1908_s19 }
  0xc4   :  { %705 = vrot.lane.b32.xlu2 %v2113_v2, %s1913_s24  ;;  %v2146_v15 = vpop.permute.xlu0 %346 }
  0xc5   :  { %v359_v48 = vsel %vm219_vm5, %v2146_v15, %v2148_v16 }
  0xc9   :  { %v756_v14 = vld.sshfl [vmem:[#allocation1 + $0x8] sm:$0xff pattern:$0x75316420] }
  0xca   :  { %760 = vst [vmem:[#allocation1] ss:$2 sm:$0xff] %v2061_v51 }
  0xcb   :  { %707 = vrot.lane.b32.xlu0 %v2134_v12, %s1913_s24  ;;  %189 = vrot.lane.b32.xlu1 %v2063_v52, %s1905_s17 }
  0xcc   :  { %694 = vrot.lane.b32.xlu2 %v2113_v2, %s1912_s23  ;;  %v355_v20 = vpop.permute.xlu0 %354  ;;  %v2159_v21 = vpop.permute.xlu2 %392 }
  0xcd   :  { %v356_v50 = vsel %vm219_vm5, %v2148_v16, %v355_v20 }
  0xce   :  { %v361_v8 = vmul.f32 %v356_v50, %v2219_v49  ;;  %v2288_v50 = vld [vmem:[#allocation9 + $0x10] ss:$0 sm:$0xff] }
  0xd1   :  { %v761_v17 = vld.sshfl [vmem:[#allocation1] sm:$0xff pattern:$0x75316420]  ;;  %v762_v18 = vld.sshfl [vmem:[#allocation1 + $0x8] sm:$0xff pattern:$0x75316420] }
  0xd2   :  { %773 = vst [vmem:[#allocation1] ss:$2 sm:$0xff] %v2061_v51 }
  0xd3   :  { %696 = vrot.lane.b32.xlu0 %v2134_v12, %s1912_s23  ;;  %175 = vrot.lane.b32.xlu1 %v2063_v52, %s1907_s3 }
  0xd4   :  { %683 = vrot.lane.b32.xlu2 %v2113_v2, %s1911_s22  ;;  %v2178_v26 = vpop.permute.xlu0 %374  ;;  %v2180_v27 = vpop.permute.xlu2 %390 }
  0xd5   :  { %v373_v28 = vpop.permute.xlu1 %372 }
  0xd9   :  { %v2161_v22 = vld.sshfl [vmem:[#allocation1 + $0x8] sm:$0xff pattern:$0x75316420] }
  0xda   :  { %778 = vst [vmem:[#allocation1] ss:$2 sm:$0xff] %v2061_v51 }
  0xdb   :  { %685 = vrot.lane.b32.xlu0 %v2134_v12, %s1911_s22  ;;  %721 = vrot.lane.b32.xlu1 %v720_v58, %s1907_s3  ;;  %v2227_v58 = vperm.slane %v2038_v39, 6 }
  0xdc   :  { %659 = vrot.lane.b32.xlu2 %v2134_v12, %s1909_s20 }
  0xdd   :  { %v382_v33 = vpop.permute.xlu1 %381 }
  0xde   :  { %v384_v45 = vsel %vm236_vm6, %v2178_v26, %v382_v33  ;;  %v2260_v33 = vperm.slane %v2045_v42, 5 }
  0xe1   :  { %v779_v24 = vld.sshfl [vmem:[#allocation1] sm:$0xff pattern:$0x75316420]  ;;  %v2171_v25 = vld.sshfl [vmem:[#allocation1 + $0x8] sm:$0xff pattern:$0x75316420] }
  0xe2   :  { %792 = vst [vmem:[#allocation1] ss:$2 sm:$0xff] %v2061_v51 }
  0xe3   :  { %672 = vrot.lane.b32.xlu0 %v2113_v2, %s1910_s21  ;;  %674 = vrot.lane.b32.xlu1 %v2134_v12, %s1910_s21 }
  0xe4   :  { %729 = vrot.lane.b32.xlu2 %v726_v61, %s1907_s3 }
  0xe9   :  { %v2183_v29 = vld.sshfl [vmem:[#allocation1] sm:$0xff pattern:$0x75316420]  ;;  %v2185_v30 = vld.sshfl [vmem:[#allocation1 + $0x8] sm:$0xff pattern:$0x75316420] }
  0xea   :  { %802 = vst [vmem:[#allocation1] ss:$2 sm:$0xff] %v2061_v51 }
  0xeb   :  { %662 = vrot.lane.b32.xlu0 %v2113_v2, %s1909_s20  ;;  %727 = vrot.lane.b32.xlu1 %v725_v60, %s1907_s3  ;;  %v386_v60 = vmul.f32 %v384_v45, %v2206_v40 }
  0xec   :  { %745 = vrot.lane.b32.xlu2 %v743_v3, %s1905_s17  ;;  %v400_v31 = vpop.permute.xlu0 %399  ;;  %v2192_v32 = vpop.permute.xlu2 %428 }
  0xed   :  { %v402_v63 = vsel %vm250_vm7, %v2159_v21, %v400_v31  ;;  %v2257_v31 = vperm.slane %v2045_v42, 6 }
  0xf1   :  { %v2194_v34 = vld.sshfl [vmem:[#allocation1] sm:$0xff pattern:$0x75316420] }
  0xf2   :  { %810 = vst [vmem:[#allocation1] ss:$2 sm:$0xff] %v2061_v51 }
  0xf3   :  { %739 = vrot.lane.b32.xlu0 %v2102_v62, %s1905_s17  ;;  %757 = vrot.lane.b32.xlu1 %v756_v14, %s1908_s19  ;;  %v2249_v14 = vperm.slane %v2038_v39, 2 }
  0xf4   :  { %765 = vrot.lane.b32.xlu2 %v762_v18, %s1908_s19  ;;  %v411_v36 = vpop.permute.xlu0 %410  ;;  %v436_v37 = vpop.permute.xlu2 %435  ;;  %v462_v18 = vrot.slane %v386_v60, 4 }
  0xf5   :  { %v438_v38 = vsel %vm278_vm4, %v2192_v32, %v436_v37  ;;  %v409_v61 = vpop.permute.xlu1 %408  ;;  %v2264_v37 = vperm.slane %v2038_v39, 0  ;;  %v302_v39 = vsel %vm177_vm3, %v2089_v59, %v2157_v19 }
  0xf6   :  { %v440_v44 = vmul.f32 %v2201_v35, %v438_v38  ;;  %v412_v3 = vsel %vm264_vm8, %v409_v61, %v411_v36  ;;  %v394_v38 = vsel %vm250_vm7, %v2180_v27, %v2159_v21  ;;  %v450_v21 = vrot.slane %v361_v8, 4 }
  0xf7   :  { %v403_v59 = vmul.f32 %v394_v38, %v2257_v31 }
  0xf8   :  { %1719 = vmatpush.msk.msra.mxu3 %vm365_vm1, %v440_v44  ;;  %v376_v44 = vsel %vm236_vm6, %v373_v28, %v2178_v26  ;;  %v476_v28 = vsel %vm365_vm1, %v2073_v55, %v462_v18 }
  0xf9   :  { %v812_v57 = vld.sshfl [vmem:[#allocation1 + $0x8] sm:$0xff pattern:$0x75316420]  ;;  %v2234_v62 = vld.sshfl [vmem:[#allocation1] sm:$0xff pattern:$0x75316420]  ;;  %v385_v16 = vmul.f32 %v376_v44, %v2260_v33 }
  0xfa   :  { %820 = vst [vmem:[#allocation1] ss:$2 sm:$0xff] %v2061_v51 }
  0xfb   :  { %747 = vrot.lane.b32.xlu0 %v2119_v4, %s1905_s17  ;;  %763 = vrot.lane.b32.xlu1 %v761_v17, %s1908_s19  ;;  %v404_v17 = vmul.f32 %v402_v63, %v2227_v58  ;;  %v2299_v63 = vperm.slane %v2045_v42, 2  ;;  %v461_v8 = vrot.slane %v385_v16, 4 }
  0xfc   :  { %781 = vrot.lane.b32.xlu2 %v779_v24, %s1909_s20  ;;  %v418_v4 = vpop.permute.xlu0 %417  ;;  %v338_v24 = vsel %vm205_vm9, %v2169_v23, %v2131_v10  ;;  %v2272_v10 = vperm.slane %v2045_v42, 3 }
  0xfd   :  { %v420_v11 = vsel %vm264_vm8, %v411_v36, %v418_v4  ;;  %v421_v36 = vmul.f32 %v412_v3, %v2239_v1  ;;  %v343_v26 = vmul.f32 %v338_v24, %v2249_v14  ;;  %v341_v3 = vsel %vm205_vm9, %v2129_v9, %v2169_v23 }
  0xfe   :  { %v2243_v5 = vpop.permute.xlu2 %260  ;;  %v422_v20 = vmul.f32 %v420_v11, %v2231_v56  ;;  %v360_v55 = vmul.f32 %v359_v48, %v2272_v10  ;;  %v475_v18 = vsel %vm365_vm1, %v2071_v54, %v461_v8 }
  0xff   :  { %v467_v19 = vrot.slane %v421_v36, 4  ;;  %v474_v4 = vsel %vm365_vm1, %v343_v26, %v450_v21 }
 0x100   :  { %v468_v45 = vrot.slane %v422_v20, 4 }
 0x101   :  { %v821_v15 = vld.sshfl [vmem:[#allocation1] sm:$0xff pattern:$0x75316420]  ;;  %v477_v11 = vsel %vm365_vm1, %v403_v59, %v467_v19 }
 0x102   :  { %v478_v27 = vsel %vm365_vm1, %v404_v17, %v468_v45  ;;  %828 = vst [vmem:[#allocation1] ss:$2 sm:$0xff] %v2061_v51  ;;  %v449_v17 = vrot.slane %v360_v55, 4 }
 0x103   :  { %775 = vrot.lane.b32.xlu0 %v2161_v22, %s1909_s20  ;;  %795 = vrot.lane.b32.xlu1 %v2183_v29, %s1910_s21  ;;  %v444_v22 = vrot.slane %v325_v6, 4  ;;  %v307_v29 = vmul.f32 %v302_v39, %v2264_v37 }
 0x104   :  { %815 = vrot.lane.b32.xlu2 %v812_v57, %s1911_s22  ;;  %521 = vmatpush.msra.mxu3 %v478_v27  ;;  %v427_v60 = vpop.permute.xlu1 %426 }
 0x105   :  { %v430_v57 = vsel %vm278_vm4, %v427_v60, %v2192_v32  ;;  %v472_v42 = vsel %vm365_vm1, %v307_v29, %v444_v22  ;;  %v342_v32 = vmul.f32 %v341_v3, %v2299_v63 }
 0x106   :  { %v2295_v61 = vpop.permute.xlu2 %234  ;;  %522 = vmatpush.msra.mxu3 %v476_v28  ;;  %v439_v6 = vmul.f32 %v2288_v50, %v430_v57  ;;  %v791_v28 = vmul.f32 %v2061_v51, %v2056_v47 }
 0x107   :  { %v473_v24 = vsel %vm365_vm1, %v342_v32, %v449_v17  ;;  %v231_v32 = vmul.f32 %v2043_v41, %v2065_v53 }
 0x108   :  { %523 = vmatpush.msra.mxu3 %v474_v4  ;;  %1717 = vmatpush.msk.msra.mxu2 %vm365_vm1, %v439_v6 }
 0x109   :  { %v830_v9 = vld.sshfl [vmem:[#allocation1 + $0x8] sm:$0xff pattern:$0x75316420]  ;;  %v829_v23 = vld.sshfl [vmem:[#allocation1] sm:$0xff pattern:$0x75316420] }
 0x10a   :  { %524 = vmatpush.msra.mxu3 %v472_v42  ;;  %501 = vmatpush.msra.mxu2 %v477_v11  ;;  %838 = vst [vmem:[#allocation1] ss:$2 sm:$0xff] %v2061_v51 }
 0x10b   :  { %783 = vrot.lane.b32.xlu0 %v2171_v25, %s1909_s20  ;;  %804 = vrot.lane.b32.xlu1 %v2194_v34, %s1910_s21 }
 0x10c   :  { %813 = vrot.lane.b32.xlu2 %v2234_v62, %s1911_s22  ;;  %502 = vmatpush.msra.mxu2 %v475_v18 }
 0x10e   :  { %v215_v20 = vpop.permute.xlu2 %214  ;;  %503 = vmatpush.msra.mxu2 %v473_v24 }
 0x110   :  { %504 = vmatpush.msra.mxu2 %v2137_v13 }
 0x111   :  { %v839_v25 = vld.sshfl [vmem:[#allocation1] sm:$0xff pattern:$0x75316420] }
 0x112   :  { %846 = vst [vmem:[#allocation1] ss:$2 sm:$0xff] %v2061_v51 }
 0x113   :  { %797 = vrot.lane.b32.xlu0 %v2185_v30, %s1910_s21  ;;  %833 = vrot.lane.b32.xlu1 %v830_v9, %s1912_s23  ;;  %v230_v9 = vmul.f32 %v2048_v43, %v2063_v52 }
 0x114   :  { %840 = vrot.lane.b32.xlu2 %v839_v25, %s1912_s23 }
 0x115   :  { %v263_v34 = vpop.permute.xlu0 %262  ;;  %v275_v54 = vpop.permute.xlu1 %274 }
 0x116   :  { %v2328_v62 = vpop.permute.xlu2 %203  ;;  %v269_v30 = vsel %vm264_vm8, %v263_v34, %v2243_v5  ;;  %v265_v21 = vsel %vm264_vm8, %v2243_v5, %v263_v34 }
 0x117   :  { %v272_v59 = vmul.f32 %v2239_v1, %v265_v21 }
 0x119   :  { %v847_v36 = vld.sshfl [vmem:[#allocation1] sm:$0xff pattern:$0x75316420]  ;;  %v848_v13 = vld.sshfl [vmem:[#allocation1 + $0x8] sm:$0xff pattern:$0x75316420] }
 0x11a   :  { %856 = vst [vmem:[#allocation1] ss:$2 sm:$0xff] %v2061_v51 }
 0x11b   :  { %822 = vrot.lane.b32.xlu0 %v821_v15, %s1911_s22  ;;  %831 = vrot.lane.b32.xlu1 %v829_v23, %s1912_s23  ;;  %v273_v15 = vmul.f32 %v2231_v56, %v269_v30 }
 0x11d   :  { %v247_v38 = vpop.permute.xlu0 %246  ;;  %v277_v44 = vpop.permute.xlu1 %276 }
 0x11e   :  { %v279_v45 = vsel %vm278_vm4, %v275_v54, %v277_v44  ;;  %v283_v48 = vsel %vm278_vm4, %v277_v44, %v275_v54  ;;  %v2337_v39 = vpop.permute.xlu2 %705 }
 0x11f   :  { %v286_v26 = vmul.f32 %v2288_v50, %v279_v45  ;;  %v287_v27 = vmul.f32 %v2201_v35, %v283_v48 }
 0x121   :  { %540 = vmatpush.msrb.mxu2 %v286_v26  ;;  %560 = vmatpush.msrb.mxu3 %v287_v27  ;;  %v857_v16 = vld.sshfl [vmem:[#allocation1] sm:$0xff pattern:$0x75316420] }
 0x122   :  { %858 = vrot.lane.b32.xlu2 %v857_v16, %s1913_s24  ;;  %877 = vst [vmem:[#allocation1] ss:$2 sm:$0xff] %v791_v28 }
 0x123   :  { %561 = vmatpush.msrb.mxu3 %v273_v15  ;;  %651 = vrot.lane.b32.xlu0 %v2113_v2, %s1908_s19 }
 0x124   :  { %851 = vrot.lane.b32.xlu1 %v848_v13, %s1913_s24  ;;  %541 = vmatpush.msrb.mxu2 %v272_v59 }
 0x125   :  { %v218_v5 = vpop.permute.xlu0 %217  ;;  %v249_v19 = vpop.permute.xlu1 %248 }
 0x126   :  { %v251_v51 = vsel %vm250_vm7, %v247_v38, %v249_v19  ;;  %v255_v22 = vsel %vm250_vm7, %v249_v19, %v247_v38  ;;  %v695_v55 = vpop.permute.xlu2 %694  ;;  %v223_v42 = vsel %vm219_vm5, %v215_v20, %v218_v5  ;;  %v220_v17 = vsel %vm219_vm5, %v218_v5, %v215_v20 }
 0x127   :  { %v258_v29 = vmul.f32 %v2257_v31, %v251_v51  ;;  %v259_v60 = vmul.f32 %v2227_v58, %v255_v22  ;;  %v227_v18 = vmul.f32 %v2219_v49, %v220_v17 }
 0x129   :  { %542 = vmatpush.msrb.mxu2 %v258_v29  ;;  %562 = vmatpush.msrb.mxu3 %v259_v60 }
 0x12a   :  { %648 = vrot.lane.b32.xlu2 %v2134_v12, %s1908_s19 }
 0x12b   :  { %625 = vrot.lane.b32.xlu0 %v2134_v12, %s1907_s3 }
 0x12c   :  { %849 = vrot.lane.b32.xlu1 %v847_v36, %s1913_s24 }
 0x12d   :  { %v187_v57 = vpop.permute.xlu0 %186  ;;  %v233_v3 = vpop.permute.xlu1 %232 }
 0x12e   :  { %v237_v4 = vsel %vm236_vm6, %v233_v3, %v2295_v61  ;;  %v241_v6 = vsel %vm236_vm6, %v2295_v61, %v233_v3  ;;  %v684_v23 = vpop.permute.xlu2 %683  ;;  %v226_v61 = vmul.f32 %v2272_v10, %v223_v42 }
 0x12f   :  { %v244_v8 = vmul.f32 %v2260_v33, %v237_v4  ;;  %v245_v11 = vmul.f32 %v2206_v40, %v241_v6 }
 0x131   :  { %543 = vmatpush.msrb.mxu2 %v244_v8  ;;  %563 = vmatpush.msrb.mxu3 %v245_v11 }
 0x132   :  { %640 = vrot.lane.b32.xlu2 %v2113_v2, %s1905_s17 }
 0x133   :  { %564 = vmatpush.msrb.mxu3 %v231_v32  ;;  %544 = vmatpush.msrb.mxu2 %v230_v9 }
 0x134   :  { %637 = vrot.lane.b32.xlu1 %v2134_v12, %s1905_s17 }
 0x135   :  { %v172_v20 = vpop.permute.xlu0 %171  ;;  %v201_v24 = vpop.permute.xlu1 %200  ;;  %545 = vmatpush.msrb.mxu2 %v226_v61  ;;  %565 = vmatpush.msrb.mxu3 %v227_v18 }
 0x136   :  { %v206_v53 = vsel %vm205_vm9, %v2328_v62, %v201_v24  ;;  %v209_v52 = vsel %vm205_vm9, %v201_v24, %v2328_v62  ;;  %v660_v54 = vpop.permute.xlu2 %659 }
 0x137   :  { %v212_v25 = vmul.f32 %v2299_v63, %v209_v52  ;;  %v213_v34 = vmul.f32 %v2249_v14, %v206_v53 }
 0x139   :  { %546 = vmatpush.msrb.mxu2 %v212_v25  ;;  %566 = vmatpush.msrb.mxu3 %v213_v34 }
 0x13c   :  { %629 = vrot.lane.b32.xlu1 %v2113_v2, %s1907_s3 }
 0x13d   :  { %v708_v36 = vpop.permute.xlu0 %707  ;;  %v190_v13 = vpop.permute.xlu1 %189 }
 0x13e   :  { %v709_v38 = vsel %vm278_vm4, %v2337_v39, %v708_v36  ;;  %v713_v44 = vsel %vm278_vm4, %v708_v36, %v2337_v39  ;;  %v192_v62 = vsel %vm191_vm2, %v190_v13, %v187_v57  ;;  %v195_v30 = vsel %vm191_vm2, %v187_v57, %v190_v13  ;;  %v2396_v27 = vpop.permute.xlu2 %729 }
 0x13f   :  { %v714_v45 = vmul.f32 %v2288_v50, %v709_v38  ;;  %v715_v48 = vmul.f32 %v2201_v35, %v713_v44  ;;  %v198_v21 = vmul.f32 %v2109_v0, %v195_v30  ;;  %v199_v26 = vmul.f32 %v2213_v46, %v192_v62 }
 0x141   :  { %547 = vmatpush.msrb.mxu2 %v198_v21  ;;  %567 = vmatpush.msrb.mxu3 %v199_v26  ;;  %v2446_v21 = vld [vmem:[%s2855_s5] sm:$0xf] }
 0x142   :  { %955 = vmatpush.msra.mxu0 %v714_v45  ;;  %975 = vmatpush.msra.mxu1 %v715_v48 }
 0x143   :  { %1720 = vmatmul.msk.f32.vlgmr.msra.gmra.mxu3 %vm479_vm10, %v2446_v21  ;;  %1718 = vmatmul.msk.f32.vlgmr.msra.gmra.mxu2 %vm479_vm10, %v2446_v21 }
 0x145   :  { %v697_v28 = vpop.permute.xlu0 %696  ;;  %v176_v39 = vpop.permute.xlu1 %175 }
 0x146   :  { %v698_v15 = vsel %vm264_vm8, %v695_v55, %v697_v28  ;;  %v702_v59 = vsel %vm264_vm8, %v697_v28, %v695_v55  ;;  %v178_v16 = vsel %vm177_vm3, %v176_v39, %v172_v20  ;;  %v181_v5 = vsel %vm177_vm3, %v172_v20, %v176_v39  ;;  %v2406_v3 = vpop.permute.xlu2 %745 }
 0x147   :  { %v703_v19 = vmul.f32 %v698_v15, %v2239_v1  ;;  %v704_v51 = vmul.f32 %v702_v59, %v2231_v56  ;;  %v184_v22 = vmul.f32 %v2125_v7, %v181_v5  ;;  %v185_v29 = vmul.f32 %v2264_v37, %v178_v16  ;;  %v2455_v15 = vld [vmem:[%s2854_s4] sm:$0xf] }
 0x148   :  { %v671_v20 = vmul.f32 %v2134_v12, %v2043_v41 }
 0x149   :  { %548 = vmatpush.msrb.mxu2 %v184_v22  ;;  %568 = vmatpush.msrb.mxu3 %v185_v29 }
 0x14a   :  { %956 = vmatpush.msra.mxu0 %v703_v19  ;;  %976 = vmatpush.msra.mxu1 %v704_v51 }
 0x14b   :  { %1722 = vmatmul.msk.f32.vlgmr.msrb.gmra.mxu3 %vm529_vm11, %v2455_v15  ;;  %1721 = vmatmul.msk.f32.vlgmr.msrb.gmra.mxu2 %vm529_vm11, %v2455_v15 }
 0x14d   :  { %v686_v60 = vpop.permute.xlu0 %685  ;;  %v722_v57 = vpop.permute.xlu1 %721 }
 0x14e   :  { %v687_v55 = vsel %vm250_vm7, %v684_v23, %v686_v60  ;;  %v691_v4 = vsel %vm250_vm7, %v686_v60, %v684_v23  ;;  %v2416_v18 = vpop.permute.xlu2 %765  ;;  %v670_v23 = vmul.f32 %v2113_v2, %v2048_v43 }
 0x14f   :  { %v692_v6 = vmul.f32 %v687_v55, %v2257_v31  ;;  %v693_v8 = vmul.f32 %v691_v4, %v2227_v58 }
 0x151   :  { %957 = vmatpush.msra.mxu0 %v692_v6  ;;  %977 = vmatpush.msra.mxu1 %v693_v8 }
 0x155   :  { %v673_v11 = vpop.permute.xlu0 %672  ;;  %v675_v42 = vpop.permute.xlu1 %674 }
 0x156   :  { %v676_v17 = vsel %vm236_vm6, %v673_v11, %v675_v42  ;;  %v680_v32 = vsel %vm236_vm6, %v675_v42, %v673_v11  ;;  %v2430_v43 = vpop.permute.xlu2 %781 }
 0x157   :  { %v681_v9 = vmul.f32 %v676_v17, %v2260_v33  ;;  %v682_v61 = vmul.f32 %v680_v32, %v2206_v40 }
 0x159   :  { %958 = vmatpush.msra.mxu0 %v681_v9  ;;  %978 = vmatpush.msra.mxu1 %v682_v61 }
 0x15b   :  { %959 = vmatpush.msra.mxu0 %v670_v23  ;;  %979 = vmatpush.msra.mxu1 %v671_v20 }
 0x15d   :  { %v663_v24 = vpop.permute.xlu0 %662  ;;  %v2422_v53 = vpop.permute.xlu1 %727 }
 0x15e   :  { %v664_v52 = vsel %vm219_vm5, %v663_v24, %v660_v54  ;;  %v667_v25 = vsel %vm219_vm5, %v660_v54, %v663_v24  ;;  %v734_v34 = vsel %vm177_vm3, %v722_v57, %v2422_v53  ;;  %v816_v30 = vpop.permute.xlu2 %815 }
 0x15f   :  { %v668_v36 = vmul.f32 %v667_v25, %v2272_v10  ;;  %v669_v13 = vmul.f32 %v664_v52, %v2219_v49  ;;  %v735_v54 = vmul.f32 %v734_v34, %v2125_v7 }
 0x161   :  { %960 = vmatpush.msra.mxu0 %v668_v36  ;;  %980 = vmatpush.msra.mxu1 %v669_v13 }
 0x165   :  { %v740_v41 = vpop.permute.xlu0 %739  ;;  %v2432_v2 = vpop.permute.xlu1 %757 }
 0x166   :  { %v752_v12 = vsel %vm191_vm2, %v740_v41, %v2406_v3  ;;  %v814_v39 = vpop.permute.xlu2 %813 }
 0x167   :  { %v753_v38 = vmul.f32 %v752_v12, %v2109_v0 }
 0x169   :  { %v866_v44 = vrot.slane %v753_v38, 4 }
 0x16b   :  { %v2439_v62 = vsel %vm365_vm1, %v735_v54, %v866_v44  ;;  %v879_v44 = vld.sshfl [vmem:[#allocation1 + $0x8] sm:$0xff pattern:$0x75316420] }
 0x16d   :  { %v748_v45 = vpop.permute.xlu0 %747  ;;  %v2441_v48 = vpop.permute.xlu1 %763 }
 0x16e   :  { %v841_v5 = vpop.permute.xlu2 %840  ;;  %v749_v32 = vsel %vm191_vm2, %v2406_v3, %v748_v45  ;;  %v767_v38 = vsel %vm205_vm9, %v2441_v48, %v2416_v18  ;;  %v731_v45 = vsel %vm177_vm3, %v2422_v53, %v2396_v27  ;;  %v817_v27 = vsel %vm250_vm7, %v814_v39, %v816_v30  ;;  %v878_v39 = vld.sshfl [vmem:[#allocation1] sm:$0xff pattern:$0x75316420] }
 0x16f   :  { %v754_v3 = vmul.f32 %v749_v32, %v2213_v46  ;;  %v772_v18 = vmul.f32 %v767_v38, %v2249_v14 }
 0x175   :  { %v776_v26 = vpop.permute.xlu0 %775  ;;  %v796_v28 = vpop.permute.xlu1 %795 }
 0x17c   :  { %v859_v22 = vpop.permute.xlu2 %858 }
 0x17d   :  { %v784_v59 = vpop.permute.xlu0 %783  ;;  %v805_v16 = vpop.permute.xlu1 %804 }
 0x17e   :  { %v785_v4 = vsel %vm219_vm5, %v2430_v43, %v784_v59 }
 0x17f   :  { %v790_v9 = vmul.f32 %v785_v4, %v2219_v49 }
 0x184   :  { %v649_v8 = vpop.permute.xlu2 %648 }
 0x185   :  { %v798_v19 = vpop.permute.xlu0 %797  ;;  %v834_v51 = vpop.permute.xlu1 %833 }
 0x186   :  { %v807_v57 = vsel %vm236_vm6, %v798_v19, %v805_v16  ;;  %v843_v55 = vsel %vm264_vm8, %v834_v51, %v841_v5  ;;  %v799_v54 = vsel %vm236_vm6, %v796_v28, %v798_v19  ;;  %v788_v5 = vsel %vm219_vm5, %v776_v26, %v2430_v43 }
 0x187   :  { %v809_v11 = vmul.f32 %v807_v57, %v2206_v40  ;;  %v845_v42 = vmul.f32 %v843_v55, %v2231_v56  ;;  %v808_v28 = vmul.f32 %v799_v54, %v2260_v33  ;;  %v826_v55 = vmul.f32 %v817_v27, %v2257_v31 }
 0x189   :  { %v885_v41 = vrot.slane %v809_v11, 4  ;;  %v891_v12 = vrot.slane %v845_v42, 4  ;;  %v884_v4 = vrot.slane %v808_v28, 4 }
 0x18b   :  { %v899_v19 = vsel %vm365_vm1, %v879_v44, %v885_v41  ;;  %v898_v42 = vsel %vm365_vm1, %v878_v39, %v884_v4 }
 0x18d   :  { %v823_v29 = vpop.permute.xlu0 %822  ;;  %v832_v60 = vpop.permute.xlu1 %831 }
 0x18e   :  { %v825_v6 = vsel %vm250_vm7, %v816_v30, %v823_v29  ;;  %v835_v36 = vsel %vm264_vm8, %v832_v60, %v834_v51  ;;  %v867_v51 = vrot.slane %v754_v3, 4  ;;  %v789_v29 = vmul.f32 %v788_v5, %v2272_v10 }
 0x18f   :  { %v827_v24 = vmul.f32 %v825_v6, %v2227_v58  ;;  %v844_v59 = vmul.f32 %v835_v36, %v2239_v1  ;;  %v770_v30 = vsel %vm205_vm9, %v2432_v2, %v2441_v48 }
 0x191   :  { %v901_v16 = vsel %vm365_vm1, %v827_v24, %v891_v12  ;;  %v890_v60 = vrot.slane %v844_v59, 4 }
 0x193   :  { %v900_v11 = vsel %vm365_vm1, %v826_v55, %v890_v60 }
 0x195   :  { %v652_v17 = vpop.permute.xlu0 %651 }
 0x196   :  { %v653_v61 = vsel %vm205_vm9, %v652_v17, %v649_v8  ;;  %v656_v23 = vsel %vm205_vm9, %v649_v8, %v652_v17  ;;  %v852_v20 = vpop.permute.xlu1 %851  ;;  %v872_v8 = vrot.slane %v789_v29, 4  ;;  %v641_v17 = vpop.permute.xlu2 %640 }
 0x197   :  { %v657_v52 = vmul.f32 %v656_v23, %v2299_v63  ;;  %v658_v25 = vmul.f32 %v653_v61, %v2249_v14  ;;  %v861_v34 = vsel %vm278_vm4, %v852_v20, %v859_v22  ;;  %v736_v22 = vmul.f32 %v731_v45, %v2264_v37 }
 0x198   :  { %v863_v13 = vmul.f32 %v2201_v35, %v861_v34  ;;  %v873_v35 = vrot.slane %v790_v9, 4 }
 0x199   :  { %961 = vmatpush.msra.mxu0 %v657_v52  ;;  %981 = vmatpush.msra.mxu1 %v658_v25  ;;  %v895_v6 = vsel %vm365_vm1, %v736_v22, %v867_v51 }
 0x19a   :  { %1727 = vmatpush.msk.msra.mxu3 %vm365_vm1, %v863_v13  ;;  %v897_v43 = vsel %vm365_vm1, %v772_v18, %v873_v35 }
 0x19c   :  { %940 = vmatpush.msra.mxu3 %v901_v16 }
 0x19e   :  { %v850_v53 = vpop.permute.xlu1 %849  ;;  %941 = vmatpush.msra.mxu3 %v899_v19 }
 0x19f   :  { %v853_v57 = vsel %vm278_vm4, %v850_v53, %v852_v20  ;;  %v626_v20 = vpop.permute.xlu0 %625 }
 0x1a0   :  { %v862_v26 = vmul.f32 %v2288_v50, %v853_v57  ;;  %942 = vmatpush.msra.mxu3 %v897_v43  ;;  %v771_v50 = vmul.f32 %v770_v30, %v2299_v63 }
 0x1a2   :  { %1725 = vmatpush.msk.msra.mxu2 %vm365_vm1, %v862_v26  ;;  %943 = vmatpush.msra.mxu3 %v895_v6  ;;  %v896_v9 = vsel %vm365_vm1, %v771_v50, %v872_v8  ;;  %v1914_v26 = vmov 512.0  }
 0x1a3   :  { %1728 = vmatmul.msk.f32.vlgmr.msra.gmra.mxu3 %vm479_vm10, %v2446_v21  ;;  %1763 = vrcp.f32 %v1914_v26 }
 0x1a4   :  { %920 = vmatpush.msra.mxu2 %v900_v11  ;;  %v1915_v11 = vmov 839922192  }
 0x1a5   :  { %v1033_v50 = vunpack.c.l.s4 %v1915_v11 }
 0x1a6   :  { %v638_v32 = vpop.permute.xlu1 %637  ;;  %921 = vmatpush.msra.mxu2 %v898_v42 }
 0x1a7   :  { %v642_v2 = vsel %vm191_vm2, %v641_v17, %v638_v32  ;;  %v645_v48 = vsel %vm191_vm2, %v638_v32, %v641_v17 }
 0x1a8   :  { %v646_v61 = vmul.f32 %v645_v48, %v2109_v0  ;;  %v647_v23 = vmul.f32 %v642_v2, %v2213_v46  ;;  %922 = vmatpush.msra.mxu2 %v896_v9  ;;  %v2544_v48 = vunpack.c.0.s8 %v1033_v50 }
 0x1a9   :  { %v1764_v55 = vpop.eup %1763 }
 0x1aa   :  { %923 = vmatpush.msra.mxu2 %v2439_v62  ;;  %962 = vmatpush.msra.mxu0 %v646_v61  ;;  %v1024_v4 = vmul.f32 512.0, %v1764_v55  ;;  %vm1028_vm12 = vweird.f32 %v1764_v55 }
 0x1ab   :  { %982 = vmatpush.msra.mxu1 %v647_v23  ;;  %1726 = vmatmul.msk.f32.vlgmr.msra.gmra.mxu2 %vm479_vm10, %v2446_v21 }
 0x1ac   :  { %v1025_v6 = vsub.f32 1.0, %v1024_v4 }
 0x1ae   :  { %v630_v24 = vpop.permute.xlu1 %629  ;;  %v1026_v30 = vmul.f32 %v1764_v55, %v1025_v6 }
 0x1af   :  { %v631_v52 = vsel %vm177_vm3, %v630_v24, %v626_v20  ;;  %v634_v25 = vsel %vm177_vm3, %v626_v20, %v630_v24 }
 0x1b0   :  { %v635_v34 = vmul.f32 %v634_v25, %v2125_v7  ;;  %v636_v36 = vmul.f32 %v631_v52, %v2264_v37  ;;  %v1027_v39 = vadd.f32 %v1764_v55, %v1026_v30 }
 0x1b2   :  { %963 = vmatpush.msra.mxu0 %v635_v34  ;;  %983 = vmatpush.msra.mxu1 %v636_v36  ;;  %v2541_v32 = vsel %vm1028_vm12, %v1764_v55, %v1027_v39  ;;  %v1081_v55 = vld [vmem:[%s2858_s8] sm:$0xf] }
 0x1b3   :  { %1730 = vmatmul.msk.f32.vlgmr.msra.gmra.mxu1 %vm529_vm11, %v2455_v15  ;;  %1729 = vmatmul.msk.f32.vlgmr.msra.gmra.mxu0 %vm529_vm11, %v2455_v15 }
 0x1c6   :  { %v526_v62 = vpop.f32.mrf.mxu3  ;;  %v506_v21 = vpop.f32.mrf.mxu2 }
 0x1ce   :  { %v570_v13 = vpop.f32.mrf.mxu3  ;;  %v550_v3 = vpop.f32.mrf.mxu2 }
 0x1cf   :  { %v571_v41 = vadd.f32 %v570_v13, %v526_v62  ;;  %v551_v12 = vadd.f32 %v550_v3, %v506_v21 }
 0x1d1   :  { %v575_v38 = vrot.slane %v571_v41, 4 }
 0x1d3   :  { %v2529_v54 = vsel %vm365_vm1, %v551_v12, %v575_v38 }
 0x1d4   :  { %999 = vst [vmem:[#allocation1] ss:$2 sm:$0xff] %v2529_v54 }
 0x1db   :  { %v1000_v44 = vld.sshfl [vmem:[#allocation1] sm:$0xff pattern:$0x75316420]  ;;  %v1001_v45 = vld.sshfl [vmem:[#allocation1 + $0x8] sm:$0xff pattern:$0x75316420] }
 0x1dc   :  { %v1010_v35 = vsel %vm365_vm1, %v1000_v44, 0.0  ;;  %v1011_v59 = vsel %vm365_vm1, %v1001_v45, 0.0  ;;  %v1916_v45 = vmov 0  }
 0x1dd   :  { %v1012_v16 = vadd.f32 %v1011_v59, %v1010_v35  ;;  %1758 = vset.pattern.permute.xlu2 %v1916_v45  ;;  %1759 = vset.pattern.permute.xlu0 %v1916_v45 }
 0x1de   :  { %1760 = vset.pattern.permute.xlu1 %v1916_v45 }
 0x1df   :  { %1013 = vadd.xlane.f32.xlu2 %v1012_v16 }
 0x226   :  { %v945_v15 = vpop.f32.mrf.mxu3 }
 0x22e   :  { %v925_v5 = vpop.f32.mrf.mxu2 }
 0x230   :  { %v985_v51 = vpop.f32.mrf.mxu1  ;;  %v965_v18 = vpop.f32.mrf.mxu0 }
 0x231   :  { %v986_v28 = vadd.f32 %v985_v51, %v945_v15  ;;  %v966_v19 = vadd.f32 %v965_v18, %v925_v5 }
 0x233   :  { %v990_v22 = vrot.slane %v986_v28, 4 }
 0x235   :  { %v2535_v27 = vsel %vm365_vm1, %v966_v19, %v990_v22 }
 0x236   :  { %1003 = vst [vmem:[#allocation1 + $0x10] ss:$2 sm:$0xff] %v2535_v27 }
 0x23d   :  { %v1004_v53 = vld.sshfl [vmem:[#allocation1 + $0x10] sm:$0xff pattern:$0x75316420]  ;;  %v1005_v29 = vld.sshfl [vmem:[#allocation1 + $0x18] sm:$0xff pattern:$0x75316420] }
 0x23e   :  { %v1015_v60 = vsel %vm365_vm1, %v1004_v53, 0.0  ;;  %v1016_v57 = vsel %vm365_vm1, %v1005_v29, 0.0 }
 0x23f   :  { %v1017_v43 = vadd.f32 %v1016_v57, %v1015_v60  ;;  %v1068_v60 = vld [vmem:[%s2857_s7] sm:$0xf] }
 0x241   :  { %1018 = vadd.xlane.f32.xlu0 %v1017_v43 }
 0x252   :  { %v1014_v8 = vpop.xlane.xlu2 %1013 }
 0x253   :  { %v1020_v17 = vsel %vm365_vm1, %v1014_v8, 0.0 }
 0x2b4   :  { %v1019_v42 = vpop.xlane.xlu0 %1018 }
 0x2b5   :  { %v1021_v2 = vsel %vm365_vm1, %v1019_v42, 0.0 }
 0x2b6   :  { %v1022_v9 = vadd.f32 %v1021_v2, %v1020_v17 }
 0x2b8   :  { %v1030_v61 = vmul.f32 %v2541_v32, %v1022_v9 }
 0x2ba   :  { %v1035_v23 = vperm.slane %v1030_v61, %v2544_v48 }
 0x2bc   :  { %v1037_v20 = vsub.f32 %v2529_v54, %v1035_v23  ;;  %v1038_v24 = vsub.f32 %v2535_v27, %v1035_v23 }
 0x2be   :  { %v1039_v52 = vmul.f32 %v1037_v20, %v1037_v20  ;;  %v1040_v25 = vmul.f32 %v1038_v24, %v1038_v24 }
 0x2c0   :  { %1047 = vst [vmem:[#allocation1 + $0x10] ss:$2 sm:$0xff] %v1040_v25 }
 0x2c1   :  { %1043 = vst [vmem:[#allocation1] ss:$2 sm:$0xff] %v1039_v52 }
 0x2c7   :  { %v1048_v34 = vld.sshfl [vmem:[#allocation1 + $0x10] sm:$0xff pattern:$0x75316420]  ;;  %v1049_v36 = vld.sshfl [vmem:[#allocation1 + $0x18] sm:$0xff pattern:$0x75316420] }
 0x2c8   :  { %v1059_v62 = vsel %vm365_vm1, %v1048_v34, 0.0  ;;  %v1060_v21 = vsel %vm365_vm1, %v1049_v36, 0.0  ;;  %v1044_v13 = vld.sshfl [vmem:[#allocation1] sm:$0xff pattern:$0x75316420] }
 0x2c9   :  { %v1061_v3 = vadd.f32 %v1060_v21, %v1059_v62  ;;  %v1045_v41 = vld.sshfl [vmem:[#allocation1 + $0x8] sm:$0xff pattern:$0x75316420]  ;;  %v1054_v12 = vsel %vm365_vm1, %v1044_v13, 0.0 }
 0x2ca   :  { %v1055_v38 = vsel %vm365_vm1, %v1045_v41, 0.0 }
 0x2cb   :  { %1062 = vadd.xlane.f32.xlu2 %v1061_v3  ;;  %v1056_v44 = vadd.f32 %v1055_v38, %v1054_v12 }
 0x2cd   :  { %1057 = vadd.xlane.f32.xlu1 %v1056_v44 }
 0x33e   :  { %v1063_v35 = vpop.xlane.xlu2 %1062 }
 0x33f   :  { %v1065_v59 = vsel %vm365_vm1, %v1063_v35, 0.0 }
 0x340   :  { %v1058_v16 = vpop.xlane.xlu1 %1057 }
 0x341   :  { %v1064_v15 = vsel %vm365_vm1, %v1058_v16, 0.0 }
 0x342   :  { %v1066_v5 = vadd.f32 %v1065_v59, %v1064_v15 }
 0x344   :  { %v1067_v51 = vmul.f32 %v1066_v5, %v2541_v32 }
 0x346   :  { %v1069_v18 = vadd.f32 1e-05, %v1067_v51 }
 0x348   :  { %1765 = vrsqrt.f32 %v1069_v18  ;;  %vm1076_vm14 = vweird.f32 %v1069_v18 }
 0x34e   :  { %v1766_v28 = vpop.eup %1765 }
 0x34f   :  { %v1071_v19 = vmul.f32 %v1766_v28, %v1069_v18  ;;  %vm1077_vm13 = vweird.f32 %v1766_v28 }
 0x350   :  { %vm1078_vm15 = vmor %vm1076_vm14, %vm1077_vm13 }
 0x351   :  { %v1072_v22 = vmul.f32 %v1766_v28, %v1071_v19 }
 0x353   :  { %v1073_v53 = vmul.f32 0.5, %v1072_v22 }
 0x355   :  { %v1074_v29 = vsub.f32 1.5, %v1073_v53 }
 0x357   :  { %v1075_v57 = vmul.f32 %v1766_v28, %v1074_v29 }
 0x359   :  { %v1079_v43 = vsel %vm1078_vm15, %v1766_v28, %v1075_v57 }
 0x35a   :  { %v1080_v26 = vmul.f32 %v1079_v43, %v1068_v60 }
 0x35c   :  { %1087 = vperm.xlu2 %1758, %v1080_v26   ;;  %v1082_v4 = vmul.f32 %v1080_v26, %v1030_v61 }
 0x35e   :  { %v1083_v6 = vsub.f32 %v1081_v55, %v1082_v4 }
 0x360   :  { %1097 = vperm.xlu0 %1759, %v1083_v6  }
 0x3b6   :  { %v1088_v30 = vpop.permute.xlu2 %1087 }
 0x3b7   :  { %v1092_v39 = vperm.slane %v1088_v30, %v2544_v48 }
 0x3b9   :  { %v1094_v11 = vmul.f32 %v1092_v39, %v2529_v54  ;;  %v1346_v50 = vmul.f32 %v1092_v39, %v2535_v27 }
 0x3d2   :  { %v1098_v8 = vpop.permute.xlu0 %1097 }
 0x3d3   :  { %v1102_v42 = vperm.slane %v1098_v8, %v2544_v48 }
 0x3d5   :  { %v1104_v17 = vadd.f32 %v1102_v42, %v1094_v11  ;;  %v2567_v2 = vadd.f32 %v1346_v50, %v1102_v42 }
 0x3d7   :  { %v2569_v9 = vmax.f32 %v1104_v17, 0.0  ;;  %v2614_v18 = vmax.f32 %v2567_v2, 0.0 }
 0x3d9   :  { %1107 = vst [vmem:[#allocation1] ss:$2 sm:$0xff] %v2569_v9  ;;  %v1179_v5 = vmul.f32 %v2569_v9, %v2056_v47 }
 0x3e0   :  { %v1108_v61 = vld.sshfl [vmem:[#allocation1 + $0x8] sm:$0xff pattern:$0x75316420] }
 0x3e1   :  { %1109 = vrot.lane.b32.xlu0 %v1108_v61, %s1907_s3  ;;  %1112 = vst [vmem:[#allocation1] ss:$2 sm:$0xff] %v2569_v9 }
 0x3e8   :  { %v1114_v23 = vld.sshfl [vmem:[#allocation1 + $0x8] sm:$0xff pattern:$0x75316420]  ;;  %v1113_v20 = vld.sshfl [vmem:[#allocation1] sm:$0xff pattern:$0x75316420] }
 0x3e9   :  { %1117 = vrot.lane.b32.xlu2 %v1114_v23, %s1907_s3  ;;  %1115 = vrot.lane.b32.xlu1 %v1113_v20, %s1907_s3  ;;  %1125 = vst [vmem:[#allocation1] ss:$2 sm:$0xff] %v2569_v9 }
 0x3f0   :  { %v1126_v54 = vld.sshfl [vmem:[#allocation1 + $0x8] sm:$0xff pattern:$0x75316420] }
 0x3f1   :  { %1127 = vrot.lane.b32.xlu0 %v1126_v54, %s1905_s17  ;;  %1130 = vst [vmem:[#allocation1] ss:$2 sm:$0xff] %v2569_v9 }
 0x3f8   :  { %v1132_v27 = vld.sshfl [vmem:[#allocation1 + $0x8] sm:$0xff pattern:$0x75316420]  ;;  %v1131_v24 = vld.sshfl [vmem:[#allocation1] sm:$0xff pattern:$0x75316420] }
 0x3f9   :  { %1135 = vrot.lane.b32.xlu0 %v1132_v27, %s1905_s17  ;;  %1133 = vrot.lane.b32.xlu2 %v1131_v24, %s1905_s17  ;;  %1143 = vst [vmem:[#allocation1] ss:$2 sm:$0xff] %v2569_v9 }
 0x400   :  { %v1144_v52 = vld.sshfl [vmem:[#allocation1 + $0x8] sm:$0xff pattern:$0x75316420] }
 0x401   :  { %1145 = vrot.lane.b32.xlu1 %v1144_v52, %s1908_s19  ;;  %1148 = vst [vmem:[#allocation1] ss:$2 sm:$0xff] %v2569_v9 }
 0x408   :  { %v1150_v25 = vld.sshfl [vmem:[#allocation1 + $0x8] sm:$0xff pattern:$0x75316420]  ;;  %v1149_v34 = vld.sshfl [vmem:[#allocation1] sm:$0xff pattern:$0x75316420] }
 0x409   :  { %1153 = vrot.lane.b32.xlu2 %v1150_v25, %s1908_s19  ;;  %1151 = vrot.lane.b32.xlu1 %v1149_v34, %s1908_s19  ;;  %1161 = vst [vmem:[#allocation1] ss:$2 sm:$0xff] %v2569_v9 }
 0x410   :  { %v1162_v36 = vld.sshfl [vmem:[#allocation1 + $0x8] sm:$0xff pattern:$0x75316420] }
 0x411   :  { %1163 = vrot.lane.b32.xlu0 %v1162_v36, %s1909_s20  ;;  %1166 = vst [vmem:[#allocation1] ss:$2 sm:$0xff] %v2569_v9 }
 0x418   :  { %v1168_v62 = vld.sshfl [vmem:[#allocation1 + $0x8] sm:$0xff pattern:$0x75316420]  ;;  %v1167_v21 = vld.sshfl [vmem:[#allocation1] sm:$0xff pattern:$0x75316420] }
 0x419   :  { %1171 = vrot.lane.b32.xlu2 %v1168_v62, %s1909_s20  ;;  %1169 = vrot.lane.b32.xlu1 %v1167_v21, %s1909_s20  ;;  %1180 = vst [vmem:[#allocation1] ss:$2 sm:$0xff] %v2569_v9 }
 0x420   :  { %v1182_v13 = vld.sshfl [vmem:[#allocation1 + $0x8] sm:$0xff pattern:$0x75316420]  ;;  %v1181_v3 = vld.sshfl [vmem:[#allocation1] sm:$0xff pattern:$0x75316420] }
 0x421   :  { %1185 = vrot.lane.b32.xlu1 %v1182_v13, %s1910_s21  ;;  %1183 = vrot.lane.b32.xlu0 %v1181_v3, %s1910_s21  ;;  %1190 = vst [vmem:[#allocation1] ss:$2 sm:$0xff] %v2569_v9 }
 0x428   :  { %v1191_v41 = vld.sshfl [vmem:[#allocation1] sm:$0xff pattern:$0x75316420] }
 0x429   :  { %1192 = vrot.lane.b32.xlu2 %v1191_v41, %s1910_s21  ;;  %1198 = vst [vmem:[#allocation1] ss:$2 sm:$0xff] %v2569_v9 }
 0x430   :  { %v1200_v12 = vld.sshfl [vmem:[#allocation1 + $0x8] sm:$0xff pattern:$0x75316420]  ;;  %v1199_v38 = vld.sshfl [vmem:[#allocation1] sm:$0xff pattern:$0x75316420] }
 0x431   :  { %1203 = vrot.lane.b32.xlu0 %v1200_v12, %s1911_s22  ;;  %1201 = vrot.lane.b32.xlu1 %v1199_v38, %s1911_s22  ;;  %1208 = vst [vmem:[#allocation1] ss:$2 sm:$0xff] %v2569_v9 }
 0x438   :  { %v1209_v44 = vld.sshfl [vmem:[#allocation1] sm:$0xff pattern:$0x75316420] }
 0x439   :  { %1210 = vrot.lane.b32.xlu1 %v1209_v44, %s1911_s22  ;;  %1216 = vst [vmem:[#allocation1] ss:$2 sm:$0xff] %v2569_v9 }
 0x440   :  { %v1218_v45 = vld.sshfl [vmem:[#allocation1 + $0x8] sm:$0xff pattern:$0x75316420]  ;;  %v1217_v35 = vld.sshfl [vmem:[#allocation1] sm:$0xff pattern:$0x75316420] }
 0x441   :  { %1221 = vrot.lane.b32.xlu1 %v1218_v45, %s1912_s23  ;;  %1219 = vrot.lane.b32.xlu2 %v1217_v35, %s1912_s23  ;;  %1226 = vst [vmem:[#allocation1] ss:$2 sm:$0xff] %v2569_v9 }
 0x443   :  { %v2638_v4 = vpop.permute.xlu2 %1117 }
 0x448   :  { %v1227_v59 = vld.sshfl [vmem:[#allocation1] sm:$0xff pattern:$0x75316420] }
 0x449   :  { %1228 = vrot.lane.b32.xlu2 %v1227_v59, %s1912_s23  ;;  %1234 = vst [vmem:[#allocation1] ss:$2 sm:$0xff] %v2569_v9 }
 0x450   :  { %v1236_v16 = vld.sshfl [vmem:[#allocation1 + $0x8] sm:$0xff pattern:$0x75316420]  ;;  %v1235_v15 = vld.sshfl [vmem:[#allocation1] sm:$0xff pattern:$0x75316420] }
 0x451   :  { %1239 = vrot.lane.b32.xlu1 %v1236_v16, %s1913_s24  ;;  %1237 = vrot.lane.b32.xlu0 %v1235_v15, %s1913_s24  ;;  %1244 = vst [vmem:[#allocation1] ss:$2 sm:$0xff] %v2569_v9 }
 0x453   :  { %v1134_v39 = vpop.permute.xlu2 %1133  ;;  %v2645_v50 = vpop.permute.xlu0 %1109 }
 0x458   :  { %v1245_v51 = vld.sshfl [vmem:[#allocation1] sm:$0xff pattern:$0x75316420] }
 0x459   :  { %1246 = vrot.lane.b32.xlu2 %v1245_v51, %s1913_s24  ;;  %1265 = vst [vmem:[#allocation1] ss:$2 sm:$0xff] %v1179_v5 }
 0x45b   :  { %v2631_v57 = vpop.permute.xlu1 %1115 }
 0x460   :  { %v2616_v28 = vld.sshfl [vmem:[#allocation1] sm:$0xff pattern:$0x75316420]  ;;  %v2618_v19 = vld.sshfl [vmem:[#allocation1 + $0x8] sm:$0xff pattern:$0x75316420] }
 0x461   :  { %1350 = vst [vmem:[#allocation1] ss:$2 sm:$0xff] %v2614_v18 }
 0x463   :  { %v2650_v17 = vpop.permute.xlu2 %1153  ;;  %v1128_v9 = vpop.permute.xlu0 %1127 }
 0x468   :  { %v2621_v22 = vld.sshfl [vmem:[#allocation1 + $0x8] sm:$0xff pattern:$0x75316420] }
 0x469   :  { %1355 = vst [vmem:[#allocation1] ss:$2 sm:$0xff] %v2614_v18 }
 0x46b   :  { %v1136_v27 = vpop.permute.xlu0 %1135 }
 0x470   :  { %v2624_v53 = vld.sshfl [vmem:[#allocation1 + $0x8] sm:$0xff pattern:$0x75316420]  ;;  %v1356_v29 = vld.sshfl [vmem:[#allocation1] sm:$0xff pattern:$0x75316420] }
 0x471   :  { %1358 = vrot.lane.b32.xlu1 %v1356_v29, %s1907_s3  ;;  %1368 = vst [vmem:[#allocation1] ss:$2 sm:$0xff] %v2614_v18 }
 0x473   :  { %v2636_v55 = vpop.permute.xlu1 %1145  ;;  %v1172_v23 = vpop.permute.xlu2 %1171 }
 0x478   :  { %v2628_v60 = vld.sshfl [vmem:[#allocation1 + $0x8] sm:$0xff pattern:$0x75316420] }
 0x479   :  { %1373 = vst [vmem:[#allocation1] ss:$2 sm:$0xff] %v2614_v18 }
 0x47b   :  { %v2643_v30 = vpop.permute.xlu1 %1151 }
 0x480   :  { %v1375_v43 = vld.sshfl [vmem:[#allocation1 + $0x8] sm:$0xff pattern:$0x75316420]  ;;  %v1374_v26 = vld.sshfl [vmem:[#allocation1] sm:$0xff pattern:$0x75316420] }
 0x481   :  { %1378 = vrot.lane.b32.xlu0 %v1375_v43, %s1905_s17  ;;  %1376 = vrot.lane.b32.xlu2 %v1374_v26, %s1905_s17  ;;  %1386 = vst [vmem:[#allocation1] ss:$2 sm:$0xff] %v2614_v18 }
 0x483   :  { %v1193_v52 = vpop.permute.xlu2 %1192  ;;  %v1164_v36 = vpop.permute.xlu0 %1163 }
 0x488   :  { %v2640_v6 = vld.sshfl [vmem:[#allocation1 + $0x8] sm:$0xff pattern:$0x75316420] }
 0x489   :  { %1391 = vst [vmem:[#allocation1] ss:$2 sm:$0xff] %v2614_v18 }
 0x48b   :  { %v1170_v42 = vpop.permute.xlu1 %1169 }
 0x48c   :  { %v1173_v5 = vsel %vm219_vm5, %v1170_v42, %v1172_v23  ;;  %v1176_v51 = vsel %vm219_vm5, %v1164_v36, %v1170_v42 }
 0x48d   :  { %v1177_v42 = vmul.f32 %v1176_v51, %v2272_v10 }
 0x490   :  { %v1393_v8 = vld.sshfl [vmem:[#allocation1 + $0x8] sm:$0xff pattern:$0x75316420]  ;;  %v1392_v11 = vld.sshfl [vmem:[#allocation1] sm:$0xff pattern:$0x75316420] }
 0x491   :  { %1396 = vrot.lane.b32.xlu2 %v1393_v8, %s1908_s19  ;;  %1394 = vrot.lane.b32.xlu1 %v1392_v11, %s1908_s19  ;;  %1404 = vst [vmem:[#allocation1] ss:$2 sm:$0xff] %v2614_v18  ;;  %v1140_v8 = vsel %vm191_vm2, %v1128_v9, %v1134_v39  ;;  %v1137_v11 = vsel %vm191_vm2, %v1134_v39, %v1136_v27 }
 0x492   :  { %v1141_v27 = vmul.f32 %v1140_v8, %v2109_v0 }
 0x493   :  { %v1186_v61 = vpop.permute.xlu1 %1185  ;;  %v1184_v3 = vpop.permute.xlu0 %1183 }
 0x494   :  { %v1195_v16 = vsel %vm236_vm6, %v1186_v61, %v1193_v52  ;;  %v1187_v15 = vsel %vm236_vm6, %v1184_v3, %v1186_v61  ;;  %v2687_v3 = vld [vmem:[#allocation9 + $0x18] ss:$0 sm:$0xff] }
 0x495   :  { %v1196_v61 = vmul.f32 %v1187_v15, %v2260_v33 }
 0x498   :  { %v1405_v2 = vld.sshfl [vmem:[#allocation1 + $0x8] sm:$0xff pattern:$0x75316420] }
 0x499   :  { %1406 = vrot.lane.b32.xlu0 %v1405_v2, %s1909_s20  ;;  %1409 = vst [vmem:[#allocation1] ss:$2 sm:$0xff] %v2614_v18  ;;  %v1197_v2 = vmul.f32 %v1195_v16, %v2206_v40  ;;  %v1260_v16 = vrot.slane %v1177_v42, 4 }
 0x49b   :  { %v1220_v62 = vpop.permute.xlu2 %1219 }
 0x4a0   :  { %v1411_v20 = vld.sshfl [vmem:[#allocation1 + $0x8] sm:$0xff pattern:$0x75316420]  ;;  %v1410_v54 = vld.sshfl [vmem:[#allocation1] sm:$0xff pattern:$0x75316420] }
 0x4a1   :  { %1414 = vrot.lane.b32.xlu2 %v1411_v20, %s1909_s20  ;;  %1412 = vrot.lane.b32.xlu1 %v1410_v54, %s1909_s20  ;;  %1423 = vst [vmem:[#allocation1] ss:$2 sm:$0xff] %v2614_v18  ;;  %v1178_v20 = vmul.f32 %v1173_v5, %v2219_v49 }
 0x4a3   :  { %v1202_v24 = vpop.permute.xlu1 %1201  ;;  %v1229_v38 = vpop.permute.xlu2 %1228  ;;  %v1261_v15 = vrot.slane %v1178_v20, 4 }
 0x4a4   :  { %v1204_v45 = vpop.permute.xlu0 %1203 }
 0x4a5   :  { %v1205_v54 = vsel %vm250_vm7, %v1202_v24, %v1204_v45 }
 0x4a8   :  { %v1425_v25 = vld.sshfl [vmem:[#allocation1 + $0x8] sm:$0xff pattern:$0x75316420]  ;;  %v1424_v34 = vld.sshfl [vmem:[#allocation1] sm:$0xff pattern:$0x75316420] }
 0x4a9   :  { %1428 = vrot.lane.b32.xlu1 %v1425_v25, %s1910_s21  ;;  %1426 = vrot.lane.b32.xlu0 %v1424_v34, %s1910_s21  ;;  %1433 = vst [vmem:[#allocation1] ss:$2 sm:$0xff] %v2614_v18 }
 0x4ab   :  { %v1211_v21 = vpop.permute.xlu1 %1210 }
 0x4ac   :  { %v1213_v52 = vsel %vm250_vm7, %v1204_v45, %v1211_v21  ;;  %v1273_v21 = vrot.slane %v1197_v2, 4 }
 0x4ad   :  { %v1215_v45 = vmul.f32 %v1213_v52, %v2227_v58  ;;  %v1422_v52 = vmul.f32 %v2614_v18, %v2056_v47 }
 0x4b0   :  { %v1434_v13 = vld.sshfl [vmem:[#allocation1] sm:$0xff pattern:$0x75316420] }
 0x4b1   :  { %1435 = vrot.lane.b32.xlu2 %v1434_v13, %s1910_s21  ;;  %1441 = vst [vmem:[#allocation1] ss:$2 sm:$0xff] %v2614_v18  ;;  %v1142_v13 = vmul.f32 %v1137_v11, %v2213_v46 }
 0x4b3   :  { %v1222_v44 = vpop.permute.xlu1 %1221  ;;  %v1247_v23 = vpop.permute.xlu2 %1246 }
 0x4b4   :  { %v1223_v35 = vsel %vm264_vm8, %v1220_v62, %v1222_v44  ;;  %v1231_v59 = vsel %vm264_vm8, %v1222_v44, %v1229_v38  ;;  %v1272_v38 = vrot.slane %v1196_v61, 4  ;;  %v1214_v44 = vmul.f32 %v1205_v54, %v2257_v31 }
 0x4b5   :  { %v1232_v29 = vmul.f32 %v1223_v35, %v2239_v1  ;;  %v1233_v43 = vmul.f32 %v1231_v59, %v2231_v56  ;;  %v1155_v35 = vsel %vm205_vm9, %v2643_v30, %v2650_v17  ;;  %v1158_v59 = vsel %vm205_vm9, %v2636_v55, %v2643_v30 }
 0x4b6   :  { %v1119_v17 = vsel %vm177_vm3, %v2631_v57, %v2638_v4  ;;  %v1122_v55 = vsel %vm177_vm3, %v2645_v50, %v2631_v57  ;;  %v1254_v30 = vrot.slane %v1141_v27, 4  ;;  %v1159_v8 = vmul.f32 %v1158_v59, %v2299_v63 }
 0x4b7   :  { %v1278_v36 = vrot.slane %v1232_v29, 4  ;;  %v1279_v62 = vrot.slane %v1233_v43, 4  ;;  %v1160_v11 = vmul.f32 %v1155_v35, %v2249_v14  ;;  %v1286_v2 = vsel %vm365_vm1, %v2616_v28, %v1272_v38 }
 0x4b8   :  { %v1443_v41 = vld.sshfl [vmem:[#allocation1 + $0x8] sm:$0xff pattern:$0x75316420]  ;;  %v1442_v12 = vld.sshfl [vmem:[#allocation1] sm:$0xff pattern:$0x75316420]  ;;  %v1287_v4 = vsel %vm365_vm1, %v2618_v19, %v1273_v21  ;;  %v1123_v57 = vmul.f32 %v1122_v55, %v2125_v7  ;;  %v1124_v50 = vmul.f32 %v1119_v17, %v2264_v37  ;;  %v1284_v61 = vsel %vm365_vm1, %v1159_v8, %v1260_v16 }
 0x4b9   :  { %1446 = vrot.lane.b32.xlu0 %v1443_v41, %s1911_s22  ;;  %1444 = vrot.lane.b32.xlu1 %v1442_v12, %s1911_s22  ;;  %1451 = vst [vmem:[#allocation1] ss:$2 sm:$0xff] %v2614_v18  ;;  %v2690_v12 = vld [vmem:[#allocation9 + $0x10] ss:$0 sm:$0xff]  ;;  %v1288_v5 = vsel %vm365_vm1, %v1214_v44, %v1278_v36  ;;  %v1289_v51 = vsel %vm365_vm1, %v1215_v45, %v1279_v62 }
 0x4ba   :  { %v1282_v42 = vsel %vm365_vm1, %v1123_v57, %v1254_v30 }
 0x4c0   :  { %v1452_v26 = vld.sshfl [vmem:[#allocation1] sm:$0xff pattern:$0x75316420] }
 0x4c1   :  { %1453 = vrot.lane.b32.xlu1 %v1452_v26, %s1911_s22  ;;  %1459 = vst [vmem:[#allocation1] ss:$2 sm:$0xff] %v2614_v18  ;;  %v1255_v26 = vrot.slane %v1142_v13, 4 }
 0x4c3   :  { %v1240_v25 = vpop.permute.xlu1 %1239  ;;  %v1238_v34 = vpop.permute.xlu0 %1237  ;;  %v1283_v20 = vsel %vm365_vm1, %v1124_v50, %v1255_v26 }
 0x4c4   :  { %v1249_v9 = vsel %vm278_vm4, %v1240_v25, %v1247_v23  ;;  %v1241_v39 = vsel %vm278_vm4, %v1238_v34, %v1240_v25  ;;  %v1285_v23 = vsel %vm365_vm1, %v1160_v11, %v1261_v15 }
 0x4c5   :  { %v1251_v41 = vmul.f32 %v2687_v3, %v1249_v9  ;;  %v1250_v24 = vmul.f32 %v2690_v12, %v1241_v39 }
 0x4c7   :  { %1731 = vmatpush.msk.msrb.mxu2 %vm365_vm1, %v1250_v24  ;;  %1733 = vmatpush.msk.msrb.mxu3 %vm365_vm1, %v1251_v41 }
 0x4c8   :  { %v1461_v29 = vld.sshfl [vmem:[#allocation1 + $0x8] sm:$0xff pattern:$0x75316420]  ;;  %v1460_v43 = vld.sshfl [vmem:[#allocation1] sm:$0xff pattern:$0x75316420] }
 0x4c9   :  { %1311 = vmatpush.msrb.mxu2 %v1288_v5  ;;  %1331 = vmatpush.msrb.mxu3 %v1289_v51  ;;  %1469 = vst [vmem:[#allocation1] ss:$2 sm:$0xff] %v2614_v18 }
 0x4ca   :  { %1464 = vrot.lane.b32.xlu2 %v1461_v29, %s1912_s23 }
 0x4cb   :  { %1312 = vmatpush.msrb.mxu2 %v1286_v2  ;;  %1332 = vmatpush.msrb.mxu3 %v1287_v4 }
 0x4cd   :  { %1313 = vmatpush.msrb.mxu2 %v1284_v61  ;;  %1333 = vmatpush.msrb.mxu3 %v1285_v23 }
 0x4cf   :  { %1314 = vmatpush.msrb.mxu2 %v1282_v42  ;;  %1334 = vmatpush.msrb.mxu3 %v1283_v20 }
 0x4d0   :  { %v1470_v28 = vld.sshfl [vmem:[#allocation1] sm:$0xff pattern:$0x75316420] }
 0x4d1   :  { %1471 = vrot.lane.b32.xlu0 %v1470_v28, %s1912_s23  ;;  %1477 = vst [vmem:[#allocation1] ss:$2 sm:$0xff] %v2614_v18 }
 0x4d2   :  { %1462 = vrot.lane.b32.xlu2 %v1460_v43, %s1912_s23 }
 0x4d8   :  { %v1479_v19 = vld.sshfl [vmem:[#allocation1 + $0x8] sm:$0xff pattern:$0x75316420]  ;;  %v1478_v54 = vld.sshfl [vmem:[#allocation1] sm:$0xff pattern:$0x75316420] }
 0x4d9   :  { %1482 = vrot.lane.b32.xlu1 %v1479_v19, %s1913_s24  ;;  %1480 = vrot.lane.b32.xlu0 %v1478_v54, %s1913_s24  ;;  %1487 = vst [vmem:[#allocation1] ss:$2 sm:$0xff] %v2614_v18 }
 0x4db   :  { %v2742_v34 = vpop.permute.xlu2 %1376 }
 0x4e0   :  { %v1488_v25 = vld.sshfl [vmem:[#allocation1] sm:$0xff pattern:$0x75316420] }
 0x4e1   :  { %1388 = vrot.lane.b32.xlu1 %v2640_v6, %s1908_s19  ;;  %1370 = vrot.lane.b32.xlu0 %v2628_v60, %s1905_s17  ;;  %1508 = vst [vmem:[#allocation1] ss:$2 sm:$0xff] %v1422_v52  ;;  %s1700_s17 = sshll.u32 %s2861_s11, 4  ;;  %s1701_s17 = int_to_ptr.hbm [resolvable:$true] %s1700_s17 }
 0x4e2   :  { %1489 = vrot.lane.b32.xlu2 %v1488_v25, %s1913_s24 }
 0x4e3   :  { %v2744_v47 = vpop.permute.xlu1 %1358 }
 0x4e8   :  { %v1510_v25 = vld.sshfl [vmem:[#allocation1 + $0x8] sm:$0xff pattern:$0x75316420] }
 0x4ea   :  { %1360 = vrot.lane.b32.xlu2 %v2624_v53, %s1907_s3  ;;  %v2751_v53 = vld [vmem:[%s2856_s6] sm:$0xf] }
 0x4eb   :  { %v1397_v36 = vpop.permute.xlu2 %1396  ;;  %1734 = vmatmul.msk.f32.vlgmr.msrb.gmra.mxu3 %vm479_vm10, %v2751_v53  ;;  %1732 = vmatmul.msk.f32.vlgmr.msrb.gmra.mxu2 %vm479_vm10, %v2751_v53 }
 0x4f2   :  { %1352 = vrot.lane.b32.xlu2 %v2621_v22, %s1907_s3 }
 0x4f3   :  { %v1379_v6 = vpop.permute.xlu0 %1378 }
 0x4f4   :  { %v1380_v30 = vsel %vm191_vm2, %v2742_v34, %v1379_v6 }
 0x4f5   :  { %v1385_v28 = vmul.f32 %v1380_v30, %v2213_v46  ;;  %v1509_v46 = vld.sshfl [vmem:[#allocation1] sm:$0xff pattern:$0x75316420] }
 0x4fb   :  { %v1415_v18 = vpop.permute.xlu2 %1414 }
 0x503   :  { %v2746_v62 = vpop.permute.xlu1 %1394 }
 0x504   :  { %v1398_v19 = vsel %vm205_vm9, %v2746_v62, %v1397_v36 }
 0x505   :  { %v1403_v36 = vmul.f32 %v1398_v19, %v2249_v14 }
 0x50b   :  { %v1436_v9 = vpop.permute.xlu2 %1435  ;;  %v1407_v39 = vpop.permute.xlu0 %1406 }
 0x513   :  { %v1413_v60 = vpop.permute.xlu1 %1412 }
 0x514   :  { %v1416_v51 = vsel %vm219_vm5, %v1413_v60, %v1415_v18 }
 0x515   :  { %v1421_v26 = vmul.f32 %v1416_v51, %v2219_v49 }
 0x51b   :  { %v1429_v22 = vpop.permute.xlu1 %1428  ;;  %v1427_v13 = vpop.permute.xlu0 %1426 }
 0x51c   :  { %v1438_v16 = vsel %vm236_vm6, %v1429_v22, %v1436_v9  ;;  %v1430_v15 = vsel %vm236_vm6, %v1427_v13, %v1429_v22 }
 0x51d   :  { %v1440_v17 = vmul.f32 %v1438_v16, %v2206_v40  ;;  %v1439_v55 = vmul.f32 %v1430_v15, %v2260_v33  ;;  %v1419_v40 = vsel %vm219_vm5, %v1407_v39, %v1413_v60  ;;  %v1498_v60 = vrot.slane %v1385_v28, 4 }
 0x51f   :  { %v1516_v23 = vrot.slane %v1440_v17, 4  ;;  %v1515_v49 = vrot.slane %v1439_v55, 4 }
 0x521   :  { %v1529_v6 = vsel %vm365_vm1, %v1509_v46, %v1515_v49  ;;  %v1530_v9 = vsel %vm365_vm1, %v1510_v25, %v1516_v23 }
 0x524   :  { %v1465_v27 = vpop.permute.xlu2 %1464 }
 0x52b   :  { %v1445_v24 = vpop.permute.xlu1 %1444  ;;  %v1447_v21 = vpop.permute.xlu0 %1446 }
 0x52c   :  { %v1463_v41 = vpop.permute.xlu2 %1462  ;;  %v1448_v8 = vsel %vm250_vm7, %v1445_v24, %v1447_v21 }
 0x52d   :  { %v1466_v35 = vsel %vm264_vm8, %v1463_v41, %v1465_v27  ;;  %v1457_v42 = vmul.f32 %v1448_v8, %v2257_v31  ;;  %v1420_v31 = vmul.f32 %v1419_v40, %v2272_v10 }
 0x52e   :  { %v1475_v29 = vmul.f32 %v1466_v35, %v2239_v1 }
 0x52f   :  { %v1503_v13 = vrot.slane %v1420_v31, 4 }
 0x530   :  { %v1521_v57 = vrot.slane %v1475_v29, 4 }
 0x533   :  { %v1454_v44 = vpop.permute.xlu1 %1453 }
 0x534   :  { %v1456_v11 = vsel %vm250_vm7, %v1447_v21, %v1454_v44 }
 0x535   :  { %v1458_v20 = vmul.f32 %v1456_v11, %v2227_v58 }
 0x53c   :  { %v1490_v38 = vpop.permute.xlu2 %1489 }
 0x543   :  { %v1472_v45 = vpop.permute.xlu0 %1471 }
 0x544   :  { %v1474_v59 = vsel %vm264_vm8, %v1465_v27, %v1472_v45  ;;  %v1361_v5 = vpop.permute.xlu2 %1360 }
 0x545   :  { %v1476_v43 = vmul.f32 %v1474_v59, %v2231_v56  ;;  %v1362_v54 = vsel %vm177_vm3, %v2744_v47, %v1361_v5 }
 0x546   :  { %v1367_v18 = vmul.f32 %v1362_v54, %v2264_v37 }
 0x547   :  { %v1522_v50 = vrot.slane %v1476_v43, 4 }
 0x548   :  { %v1526_v21 = vsel %vm365_vm1, %v1367_v18, %v1498_v60 }
 0x549   :  { %v1532_v52 = vsel %vm365_vm1, %v1458_v20, %v1522_v50 }
 0x54b   :  { %v1483_v2 = vpop.permute.xlu1 %1482  ;;  %v1481_v4 = vpop.permute.xlu0 %1480 }
 0x54c   :  { %v1492_v1 = vsel %vm278_vm4, %v1483_v2, %v1490_v38  ;;  %v1484_v56 = vsel %vm278_vm4, %v1481_v4, %v1483_v2  ;;  %v1353_v58 = vpop.permute.xlu2 %1352 }
 0x54d   :  { %v1494_v33 = vmul.f32 %v2687_v3, %v1492_v1  ;;  %v1493_v61 = vmul.f32 %v2690_v12, %v1484_v56  ;;  %v1504_v3 = vrot.slane %v1421_v26, 4  ;;  %v1531_v12 = vsel %vm365_vm1, %v1457_v42, %v1521_v57 }
 0x54e   :  { %v1365_v10 = vsel %vm177_vm3, %v1353_v58, %v2744_v47 }
 0x54f   :  { %1735 = vmatpush.msk.msra.mxu2 %vm365_vm1, %v1493_v61  ;;  %1737 = vmatpush.msk.msra.mxu3 %vm365_vm1, %v1494_v33  ;;  %v1528_v37 = vsel %vm365_vm1, %v1403_v36, %v1504_v3  ;;  %v1366_v38 = vmul.f32 %v1365_v10, %v2125_v7 }
 0x551   :  { %1551 = vmatpush.msra.mxu2 %v1531_v12  ;;  %1571 = vmatpush.msra.mxu3 %v1532_v52 }
 0x553   :  { %v1389_v39 = vpop.permute.xlu1 %1388  ;;  %v1371_v27 = vpop.permute.xlu0 %1370  ;;  %1552 = vmatpush.msra.mxu2 %v1529_v6  ;;  %1572 = vmatpush.msra.mxu3 %v1530_v9 }
 0x554   :  { %v1401_v22 = vsel %vm205_vm9, %v1389_v39, %v2746_v62  ;;  %v1383_v14 = vsel %vm191_vm2, %v1371_v27, %v2742_v34 }
 0x555   :  { %v1402_v41 = vmul.f32 %v1401_v22, %v2299_v63  ;;  %v1384_v24 = vmul.f32 %v1383_v14, %v2109_v0  ;;  %1573 = vmatpush.msra.mxu3 %v1528_v37  ;;  %v1652_v22 = vld [vmem:[%s2859_s9] sm:$0xf]  ;;  %s1917_s9 = smov [#allocation11]  }
 0x556   :  { %s1698_s15 = sshll.u32 %s1917_s9, 4  ;;  %s1699_s15 = int_to_ptr.vmem [resolvable:$true] %s1698_s15 }
 0x557   :  { %v1497_v44 = vrot.slane %v1384_v24, 4  ;;  %1574 = vmatpush.msra.mxu3 %v1526_v21  ;;  %v1527_v47 = vsel %vm365_vm1, %v1402_v41, %v1503_v13 }
 0x558   :  { %1553 = vmatpush.msra.mxu2 %v1527_v47  ;;  %1738 = vmatmul.msk.f32.vlgmr.msra.gmra.mxu3 %vm479_vm10, %v2751_v53 }
 0x559   :  { %v1525_v34 = vsel %vm365_vm1, %v1366_v38, %v1497_v44 }
 0x55a   :  { %1554 = vmatpush.msra.mxu2 %v1525_v34 }
 0x55b   :  { %1736 = vmatmul.msk.f32.vlgmr.msra.gmra.mxu2 %vm479_vm10, %v2751_v53 }
 0x56e   :  { %v1336_v0 = vpop.f32.mrf.mxu3  ;;  %v1316_v63 = vpop.f32.mrf.mxu2 }
 0x56f   :  { %v1341_v62 = vrot.slane %v1336_v0, 4 }
 0x571   :  { %v2810_v45 = vsel %vm365_vm1, %v1316_v63, %v1341_v62 }
 0x572   :  { %1590 = vst [vmem:[#allocation1] ss:$2 sm:$0xff] %v2810_v45 }
 0x579   :  { %v1591_v7 = vld.sshfl [vmem:[#allocation1] sm:$0xff pattern:$0x75316420]  ;;  %v1592_v35 = vld.sshfl [vmem:[#allocation1 + $0x8] sm:$0xff pattern:$0x75316420] }
 0x57a   :  { %v1601_v59 = vsel %vm365_vm1, %v1591_v7, 0.0  ;;  %v1602_v16 = vsel %vm365_vm1, %v1592_v35, 0.0 }
 0x57b   :  { %v1603_v15 = vadd.f32 %v1602_v16, %v1601_v59 }
 0x57d   :  { %1604 = vadd.xlane.f32.xlu0 %v1603_v15 }
 0x5db   :  { %v1576_v5 = vpop.f32.mrf.mxu3 }
 0x5dc   :  { %v1581_v51 = vrot.slane %v1576_v5, 4 }
 0x5de   :  { %v1556_v29 = vpop.f32.mrf.mxu2 }
 0x5df   :  { %v2816_v53 = vsel %vm365_vm1, %v1556_v29, %v1581_v51 }
 0x5e0   :  { %1594 = vst [vmem:[#allocation1 + $0x10] ss:$2 sm:$0xff] %v2816_v53 }
 0x5e7   :  { %v1595_v43 = vld.sshfl [vmem:[#allocation1 + $0x10] sm:$0xff pattern:$0x75316420]  ;;  %v1596_v17 = vld.sshfl [vmem:[#allocation1 + $0x18] sm:$0xff pattern:$0x75316420] }
 0x5e8   :  { %v1606_v55 = vsel %vm365_vm1, %v1595_v43, 0.0  ;;  %v1607_v30 = vsel %vm365_vm1, %v1596_v17, 0.0 }
 0x5e9   :  { %v1608_v26 = vadd.f32 %v1607_v30, %v1606_v55 }
 0x5eb   :  { %1609 = vadd.xlane.f32.xlu1 %v1608_v26 }
 0x5f0   :  { %v1605_v8 = vpop.xlane.xlu0 %1604 }
 0x5f1   :  { %v1611_v2 = vsel %vm365_vm1, %v1605_v8, 0.0 }
 0x65e   :  { %v1610_v11 = vpop.xlane.xlu1 %1609 }
 0x65f   :  { %v1612_v4 = vsel %vm365_vm1, %v1610_v11, 0.0 }
 0x660   :  { %v1613_v57 = vadd.f32 %v1612_v4, %v1611_v2 }
 0x662   :  { %v1614_v50 = vmul.f32 %v1613_v57, %v2541_v32 }
 0x664   :  { %v1619_v1 = vperm.slane %v1614_v50, %v2544_v48 }
 0x666   :  { %v1621_v56 = vsub.f32 %v2810_v45, %v1619_v1  ;;  %v1622_v40 = vsub.f32 %v2816_v53, %v1619_v1 }
 0x668   :  { %v1623_v33 = vmul.f32 %v1621_v56, %v1621_v56  ;;  %v1624_v61 = vmul.f32 %v1622_v40, %v1622_v40 }
 0x66a   :  { %1627 = vst [vmem:[#allocation1] ss:$2 sm:$0xff] %v1623_v33 }
 0x66b   :  { %1631 = vst [vmem:[#allocation1 + $0x10] ss:$2 sm:$0xff] %v1624_v61 }
 0x671   :  { %v1628_v23 = vld.sshfl [vmem:[#allocation1] sm:$0xff pattern:$0x75316420]  ;;  %v1629_v49 = vld.sshfl [vmem:[#allocation1 + $0x8] sm:$0xff pattern:$0x75316420] }
 0x672   :  { %v1632_v42 = vld.sshfl [vmem:[#allocation1 + $0x10] sm:$0xff pattern:$0x75316420]  ;;  %v1633_v20 = vld.sshfl [vmem:[#allocation1 + $0x18] sm:$0xff pattern:$0x75316420] }
 0x673   :  { %v1643_v28 = vsel %vm365_vm1, %v1632_v42, 0.0  ;;  %v1644_v19 = vsel %vm365_vm1, %v1633_v20, 0.0  ;;  %v1638_v54 = vsel %vm365_vm1, %v1628_v23, 0.0  ;;  %v1639_v3 = vsel %vm365_vm1, %v1629_v49, 0.0 }
 0x674   :  { %v1645_v12 = vadd.f32 %v1644_v19, %v1643_v28  ;;  %v1640_v52 = vadd.f32 %v1639_v3, %v1638_v54 }
 0x676   :  { %1646 = vadd.xlane.f32.xlu0 %v1645_v12  ;;  %1641 = vadd.xlane.f32.xlu2 %v1640_v52 }
 0x6e9   :  { %v1647_v31 = vpop.xlane.xlu0 %1646  ;;  %v1642_v58 = vpop.xlane.xlu2 %1641 }
 0x6ea   :  { %v1649_v46 = vsel %vm365_vm1, %v1647_v31, 0.0  ;;  %v1648_v25 = vsel %vm365_vm1, %v1642_v58, 0.0 }
 0x6eb   :  { %v1650_v36 = vadd.f32 %v1649_v46, %v1648_v25 }
 0x6ed   :  { %v1651_v18 = vmul.f32 %v1650_v36, %v2541_v32  ;;  %v1665_v32 = vld [vmem:[%s2860_s10] sm:$0xf] }
 0x6ef   :  { %v1653_v6 = vadd.f32 1e-05, %v1651_v18 }
 0x6f1   :  { %1767 = vrsqrt.f32 %v1653_v6  ;;  %vm1660_vm2 = vweird.f32 %v1653_v6 }
 0x6f7   :  { %v1768_v9 = vpop.eup %1767 }
 0x6f8   :  { %v1655_v60 = vmul.f32 %v1768_v9, %v1653_v6  ;;  %vm1661_vm0 = vweird.f32 %v1768_v9 }
 0x6f9   :  { %vm1662_vm3 = vmor %vm1660_vm2, %vm1661_vm0 }
 0x6fa   :  { %v1656_v39 = vmul.f32 %v1768_v9, %v1655_v60 }
 0x6fc   :  { %v1657_v27 = vmul.f32 0.5, %v1656_v39 }
 0x6fe   :  { %v1658_v10 = vsub.f32 1.5, %v1657_v27 }
 0x700   :  { %v1659_v14 = vmul.f32 %v1768_v9, %v1658_v10 }
 0x702   :  { %v1663_v37 = vsel %vm1662_vm3, %v1768_v9, %v1659_v14 }
 0x703   :  { %v1664_v13 = vmul.f32 %v1663_v37, %v1652_v22 }
 0x705   :  { %1670 = vperm.xlu1 %1760, %v1664_v13   ;;  %v1666_v41 = vmul.f32 %v1664_v13, %v1614_v50 }
 0x707   :  { %v1667_v24 = vsub.f32 %v1665_v32, %v1666_v41 }
 0x709   :  { %1681 = vperm.xlu2 %1758, %v1667_v24  }
 0x763   :  { %v1682_v21 = vpop.permute.xlu2 %1681 }
 0x764   :  { %v1686_v47 = vperm.slane %v1682_v21, %v2544_v48 }
 0x777   :  { %v1671_v38 = vpop.permute.xlu1 %1670 }
 0x778   :  { %v1675_v44 = vperm.slane %v1671_v38, %v2544_v48 }
 0x77a   :  { %v1677_v34 = vmul.f32 %v1675_v44, %v2810_v45  ;;  %v1678_v0 = vmul.f32 %v1675_v44, %v2816_v53 }
 0x77c   :  { %v1688_v63 = vadd.f32 %v1686_v47, %v1677_v34  ;;  %v1689_v62 = vadd.f32 %v1686_v47, %v1678_v0 }
 0x77e   :  { %v1690_v7 = vmax.f32 %v1688_v63, 0.0  ;;  %v1691_v35 = vmax.f32 %v1689_v62, 0.0 }
 0x780   :  { %1692 = vst [vmem:[#allocation11] sm:$0xff] %v1690_v7 }
 0x781   :  { %1693 = vst [vmem:[#allocation11 + $0x8] sm:$0xff] %v1691_v35 }
 0x782   :  { %1706 = dma.vmem_to_hbm [thread:$0]  %s1699_s15, 256, %s1701_s17, [#allocation5], %s1900_s25, %s1900_s25, %s1901_s26  }
 0x783   :  { %1897 = dma.done.wait [#allocation5], 256  }
 0x784   :  { %1898 = vsyncadd [#allocation5], 4294967040 }
 0x785   :  { %1711 = vsyncpa [#allocation4], 1 }
 0x786   :  { %1712 = vsyncpa [#allocation7], 1 }
 0x787   :  { %1713 = vsyncpa [#allocation10], 1 }
 0x788   :  { %1714 = vsyncpa [#allocation5], 1 }

</bundles_post_ra>
